<compile_context>
chip_gen: v5e
topology: v5e:2x2
jax: 0.10.0
libtpu: 0.0.40
codegen_flags: <defaults>
</compile_context>

<pallas_src>
import functools

import jax
import jax.numpy as jnp
from jax.experimental import pallas as pl
from jax.experimental.pallas import tpu as pltpu

NUM_LAYERS = 3
HEADS = 4
WINDOW = 2          # sliding-window radius: |i - j| <= WINDOW (self-loops incl.)
NEG_SLOPE = 0.2     # GATConv default LeakyReLU slope
LN_EPS = 1e-5       # nn.LayerNorm default eps
NEG_INF = -1e30
LANE = 128          # TPU lane width


def _text_encoder_kernel(x_ref, w_ref, bias_ref, gamma_ref, beta_ref, out_ref,
                         *, h_real, t_real):
    Bb, Tp, Hp = x_ref.shape
    HH = w_ref.shape[2] // 3              # = HEADS * h_real
    R = Bb * Tp
    inv_h = 1.0 / h_real

    # ---- per-diagonal additive band bias, shape (1, Tp, 1), hoisted ---------
    # For diagonal d the (un-wrapped) source index of dst row i is i + d; the
    # edge is real iff 0 <= i + d < t_real, which kills circular wrap-around
    # and edges into the T-padding by construction.  d == 0 (self-loop) is
    # kept unconditionally so padded dst rows still get a finite softmax
    # (their output is sliced off in the wrapper).
    pos = jax.lax.broadcasted_iota(jnp.int32, (1, Tp, 1), 1)
    shifts, band_bias = [], []
    for d in range(-WINDOW, WINDOW + 1):
        shifts.append((-d) % Tp)
        if d == 0:
            band_bias.append(jnp.zeros((1, Tp, 1), jnp.float32))
        else:
            ok = jnp.logical_and(pos + d >= 0, pos + d < t_real)
            band_bias.append(jnp.where(ok, 0.0, NEG_INF).astype(jnp.float32))

    # ---- constant head-mean pooling matrix [HH, Hp]: (1/HEADS)*stacked-I ----
    row = jax.lax.broadcasted_iota(jnp.int32, (HH, Hp), 0)
    col = jax.lax.broadcasted_iota(jnp.int32, (HH, Hp), 1)
    pool = jnp.where((row % h_real) == col, 1.0 / HEADS, 0.0).astype(jnp.float32)

    node = x_ref[...].astype(jnp.float32)          # [Bb, Tp, Hp]; padded lanes 0

    for l in range(NUM_LAYERS):
        res = node

        # ---- fused projection (single bf16 MXU matmul per layer) -----------
        # cols [0,HH): per-head GAT projection, heads packed along lanes
        # cols [HH,2HH) / [2HH,3HH): alpha_src / alpha_dst, replicated across
        # each head's h_real lanes (att vectors folded into W in the wrapper).
        n2 = node.reshape(R, Hp).astype(jnp.bfloat16)
        proj = jnp.dot(n2, w_ref[l], preferred_element_type=jnp.float32)
        proj = proj.reshape(Bb, Tp, 3 * HH)
        hproj = proj[:, :, 0:HH]
        asrc = proj[:, :, HH:2 * HH]
        adst = proj[:, :, 2 * HH:3 * HH]

        # ---- banded attention: only 2*WINDOW+1 = 5 diagonals are live ------
        # Pass 1: running max only (no logits list kept live).
        m = None
        for idx, s in enumerate(shifts):
            src_s = asrc if s == 0 else pltpu.roll(asrc, shift=s, axis=1)
            e = adst + src_s
            e = jnp.maximum(e, NEG_SLOPE * e) + band_bias[idx]   # LeakyReLU(0.2)
            m = e if m is None else jnp.maximum(m, e)

        # Pass 2: recompute the rolled logits (XLU-slot rolls) and accumulate
        # exp / weighted values -> only (m, denom, acc) are live.
        denom = jnp.zeros((Bb, Tp, HH), jnp.float32)
        acc = jnp.zeros((Bb, Tp, HH), jnp.float32)
        for idx, s in enumerate(shifts):
            src_s = asrc if s == 0 else pltpu.roll(asrc, shift=s, axis=1)
            e = adst + src_s
            e = jnp.maximum(e, NEG_SLOPE * e) + band_bias[idx]
            p = jnp.exp(e - m)                                   # 0 on masked edges
            denom = denom + p
            h_s = hproj if s == 0 else pltpu.roll(hproj, shift=s, axis=1)
            acc = acc + p * h_s
        acc = acc * pl.reciprocal(denom, approx=True)            # EUP slot

        # ---- head mean (concat=False) via MXU pooling matmul + bias --------
        pooled = jnp.dot(acc.reshape(R, HH), pool,
                         preferred_element_type=jnp.float32).reshape(Bb, Tp, Hp)
        gat = pooled + bias_ref[l].reshape(1, 1, Hp)
        # TODO(synk): dropout omitted (identity in eval / deterministic forward).

        # ---- residual + LayerNorm (padded lanes of y are exactly 0) ---------
        # Variance via E[y^2] - mean^2 so the two cross-lane reductions are
        # independent; sums over Hp lanes / h_real == real-lane statistics.
        y = gat + res
        mean = jnp.sum(y, axis=-1, keepdims=True) * inv_h
        msq = jnp.sum(y * y, axis=-1, keepdims=True) * inv_h
        var = msq - mean * mean
        yhat = (y - mean) * jax.lax.rsqrt(var + LN_EPS)
        node = yhat * gamma_ref[l].reshape(1, 1, Hp) + beta_ref[l].reshape(1, 1, Hp)

    out_ref[...] = node.astype(out_ref.dtype)


def _tpu_config():
    """Generation-aware (num_parallel_splits, vmem_limit_bytes)."""
    kind = ""
    try:
        kind = jax.devices()[0].device_kind.lower()
    except Exception:
        pass
    vmem_cap = None
    try:
        vmem_cap = int(pltpu.get_tpu_info().vmem_capacity_bytes)
    except Exception:
        vmem_cap = None

    is_v7x = ("v7" in kind) or (vmem_cap is not None and vmem_cap <= 64 * 1024 * 1024)
    if is_v7x:
        # 2 TensorCores / 64 MiB VMEM per core: split the batch into two
        # "parallel" grid steps and keep a conservative scoped-VMEM budget.
        splits, vmem_limit = 2, 48 * 1024 * 1024
    elif ("v5" in kind) or ("v6" in kind) or (
            vmem_cap is not None and vmem_cap >= 128 * 1024 * 1024):
        # Single TensorCore / 128 MiB VMEM: one grid step, generous budget.
        splits, vmem_limit = 1, 96 * 1024 * 1024
    else:
        splits, vmem_limit = 1, 32 * 1024 * 1024   # conservative fallback
    if vmem_cap is not None:
        vmem_limit = min(vmem_limit, (vmem_cap * 3) // 4)
    return splits, vmem_limit


@jax.jit
def text_encoder(x, w, att_src, att_dst, bias, gamma, beta):
    B, T, H = x.shape
    L = NUM_LAYERS
    HH = HEADS * H

    # Fold the per-head attention vectors into the projection weight so the
    # projection matmul also emits alpha_src / alpha_dst, replicated across
    # each head's H output lanes.
    w3 = w.reshape(L, H, HEADS, H)
    a_src = jnp.einsum('lihd,lhd->lih', w3, att_src)             # [L, H, HEADS]
    a_dst = jnp.einsum('lihd,lhd->lih', w3, att_dst)
    w_aug = jnp.concatenate(
        [w, jnp.repeat(a_src, H, axis=-1), jnp.repeat(a_dst, H, axis=-1)],
        axis=-1)                                                 # [L, H, 3*HH]

    # Lane-dense layout: pad features to a multiple of 128 (zero W rows and
    # zero bias/gamma/beta keep padded lanes exactly 0 through every layer)
    # and pad T to a multiple of 8 (>= 2*WINDOW+1, keeps reshapes tile-free).
    # Padded tokens are masked out of the band and sliced off the output.
    Hp = max(LANE, ((H + LANE - 1) // LANE) * LANE)
    Tp = max(8, ((T + 7) // 8) * 8)
    x_p = jnp.pad(x, ((0, 0), (0, Tp - T), (0, Hp - H)))
    w_p = jnp.pad(w_aug, ((0, 0), (0, Hp - H), (0, 0))).astype(jnp.bfloat16)
    bias_p = jnp.pad(bias, ((0, 0), (0, Hp - H)))
    gamma_p = jnp.pad(gamma, ((0, 0), (0, Hp - H)))              # pad with 0, not 1
    beta_p = jnp.pad(beta, ((0, 0), (0, Hp - H)))

    # Generation-aware grid: one step on single-TC chips (v5e/v6e), two
    # "parallel" steps on v7x so both TensorCores get work.
    splits, vmem_limit = _tpu_config()
    bblk = B // splits if (splits > 1 and B % splits == 0) else B

    kernel = functools.partial(_text_encoder_kernel, h_real=H, t_real=T)

    # TODO(synk): for large H on v7x, single-buffer the constant-index weight
    # blocks (pipeline_mode=pl.Buffered(1)) and/or add an "arbitrary" layer
    # grid axis so only one layer's weight slab is VMEM-resident at a time.
    out = pl.pallas_call(
        kernel,
        out_shape=jax.ShapeDtypeStruct((B, Tp, Hp), jnp.float32),
        grid=(B // bblk,),
        in_specs=[
            pl.BlockSpec((bblk, Tp, Hp), lambda b: (b, 0, 0)),   # x slab
            pl.BlockSpec((L, Hp, 3 * HH), lambda b: (0, 0, 0)),  # fused W (bf16)
            pl.BlockSpec((L, Hp), lambda b: (0, 0)),             # GAT bias
            pl.BlockSpec((L, Hp), lambda b: (0, 0)),             # LN gamma
            pl.BlockSpec((L, Hp), lambda b: (0, 0)),             # LN beta
        ],
        out_specs=pl.BlockSpec((bblk, Tp, Hp), lambda b: (b, 0, 0)),
        compiler_params=pltpu.CompilerParams(
            dimension_semantics=("parallel",),
            vmem_limit_bytes=vmem_limit),
    )(x_p, w_p, bias_p, gamma_p, beta_p)
    return out[:, :T, :H]


def init_params(key, hidden):
    """Deterministic synthetic parameters (shapes follow GATConv / LayerNorm)."""
    L, HD = NUM_LAYERS, HEADS
    k_w, k_s, k_d, k_b, k_g, k_e = jax.random.split(key, 6)
    # GATConv.lin weight is [heads*out, in]; stored pre-transposed [in, heads*out].
    w = 0.1 * jax.random.normal(k_w, (L, hidden, HD * hidden), jnp.float32)
    att_src = 0.1 * jax.random.normal(k_s, (L, HD, hidden), jnp.float32)
    att_dst = 0.1 * jax.random.normal(k_d, (L, HD, hidden), jnp.float32)
    bias = 0.1 * jax.random.normal(k_b, (L, hidden), jnp.float32)
    gamma = 1.0 + 0.1 * jax.random.normal(k_g, (L, hidden), jnp.float32)
    beta = 0.1 * jax.random.normal(k_e, (L, hidden), jnp.float32)
    return w, att_src, att_dst, bias, gamma, beta


def text_encoder_reference(x, w, att_src, att_dst, bias, gamma, beta):
    """Pure-JAX dense-mask GAT reference (independent formulation).

    The projection matmul uses bf16 operands with f32 accumulation to match the
    kernel's MXU precision; everything else is exact f32.
    """
    B, T, H = x.shape
    i_idx = jnp.arange(T)[:, None]
    j_idx = jnp.arange(T)[None, :]
    mask = jnp.abs(i_idx - j_idx) <= WINDOW                      # [T, T]

    node = x.astype(jnp.float32)
    for l in range(NUM_LAYERS):
        res = node
        w_l = w[l].reshape(H, HEADS, H).astype(jnp.bfloat16)
        proj = jnp.einsum('bti,iho->btho', node.astype(jnp.bfloat16), w_l,
                          preferred_element_type=jnp.float32)    # [B,T,HEADS,H]
        a_s = jnp.einsum('btho,ho->bth', proj, att_src[l])       # [B,T,HEADS]
        a_d = jnp.einsum('btho,ho->bth', proj, att_dst[l])
        e = a_d[:, :, None, :] + a_s[:, None, :, :]              # [B, tgt, src, head]
        e = jnp.where(e > 0, e, NEG_SLOPE * e)
        e = jnp.where(mask[None, :, :, None], e, NEG_INF)
        attn = jax.nn.softmax(e, axis=2)
        agg = jnp.einsum('bijh,bjho->biho', attn, proj)
        gat = agg.mean(axis=2) + bias[l]
        y = gat + res
        mu = jnp.mean(y, axis=-1, keepdims=True)
        var = jnp.mean((y - mu) ** 2, axis=-1, keepdims=True)
        node = (y - mu) / jnp.sqrt(var + LN_EPS) * gamma[l] + beta[l]
    return node


if __name__ == "__main__":
    B, T, H = 2, 8, 32
    key = jax.random.PRNGKey(0)
    k_x, k_p = jax.random.split(key)

    x = jax.random.normal(k_x, (B, T, H), jnp.float32)
    w, att_src, att_dst, bias, gamma, beta = init_params(k_p, H)

    out = text_encoder(x, w, att_src, att_dst, bias, gamma, beta)
    jax.block_until_ready(out)

    assert out.shape == (B, T, H), out.shape
    assert jnp.all(jnp.isfinite(out))

    ref = text_encoder_reference(x, w, att_src, att_dst, bias, gamma, beta)
    max_err = float(jnp.max(jnp.abs(out - ref)))
    assert jnp.allclose(out, ref, rtol=3e-2, atol=3e-2), max_err

    print("KERNEL_OK")
</pallas_src>

<mosaic_0001>
module attributes {stable_mosaic.version = 11 : i64} {
  func.func @_text_encoder_kernel(%arg0: i32, %arg1: memref<2x8x128xf32, #tpu.memory_space<vmem>>, %arg2: memref<3x128x384xbf16, #tpu.memory_space<vmem>>, %arg3: memref<3x128xf32, #tpu.memory_space<vmem>>, %arg4: memref<3x128xf32, #tpu.memory_space<vmem>>, %arg5: memref<3x128xf32, #tpu.memory_space<vmem>>, %arg6: memref<2x8x128xf32, #tpu.memory_space<vmem>>) attributes {dimension_semantics = [#tpu.dimension_semantics<parallel>], iteration_bounds = array<i64: 1>, scalar_prefetch = 0 : i64, scratch_operands = 0 : i64, tpu.core_type = #tpu.core_type<tc>, window_params = [{transform_indices = @transform_0, window_bounds = array<i64: 2, 8, 128>}, {pipeline_mode = #tpu.pipeline_mode<synchronous>, transform_indices = @transform_1, window_bounds = array<i64: 3, 128, 384>}, {pipeline_mode = #tpu.pipeline_mode<synchronous>, transform_indices = @transform_2, window_bounds = array<i64: 3, 128>}, {pipeline_mode = #tpu.pipeline_mode<synchronous>, transform_indices = @transform_3, window_bounds = array<i64: 3, 128>}, {pipeline_mode = #tpu.pipeline_mode<synchronous>, transform_indices = @transform_4, window_bounds = array<i64: 3, 128>}, {transform_indices = @transform_5, window_bounds = array<i64: 2, 8, 128>}]} {
    %0 = tpu.iota {dimensions = array<i32: 1>} : vector<1x8x1xi32>
    %c-2_i32 = arith.constant -2 : i32
    %1 = vector.broadcast %c-2_i32 : i32 to vector<1x8x1xi32>
    %2 = arith.addi %0, %1 : vector<1x8x1xi32>
    %c0_i32 = arith.constant 0 : i32
    %3 = vector.broadcast %c0_i32 : i32 to vector<1x8x1xi32>
    %4 = arith.cmpi sge, %2, %3 : vector<1x8x1xi32>
    %c-2_i32_0 = arith.constant -2 : i32
    %5 = vector.broadcast %c-2_i32_0 : i32 to vector<1x8x1xi32>
    %6 = arith.addi %0, %5 : vector<1x8x1xi32>
    %c8_i32 = arith.constant 8 : i32
    %7 = vector.broadcast %c8_i32 : i32 to vector<1x8x1xi32>
    %8 = arith.cmpi slt, %6, %7 : vector<1x8x1xi32>
    %9 = arith.andi %4, %8 : vector<1x8x1xi1>
    %cst = arith.constant 0.000000e+00 : f32
    %cst_1 = arith.constant -1.000000e+30 : f32
    %10 = vector.broadcast %cst : f32 to vector<1x8x1xf32>
    %11 = vector.broadcast %cst_1 : f32 to vector<1x8x1xf32>
    %12 = arith.select %9, %10, %11 : vector<1x8x1xi1>, vector<1x8x1xf32>
    %c-1_i32 = arith.constant -1 : i32
    %13 = vector.broadcast %c-1_i32 : i32 to vector<1x8x1xi32>
    %14 = arith.addi %0, %13 : vector<1x8x1xi32>
    %c0_i32_2 = arith.constant 0 : i32
    %15 = vector.broadcast %c0_i32_2 : i32 to vector<1x8x1xi32>
    %16 = arith.cmpi sge, %14, %15 : vector<1x8x1xi32>
    %c-1_i32_3 = arith.constant -1 : i32
    %17 = vector.broadcast %c-1_i32_3 : i32 to vector<1x8x1xi32>
    %18 = arith.addi %0, %17 : vector<1x8x1xi32>
    %c8_i32_4 = arith.constant 8 : i32
    %19 = vector.broadcast %c8_i32_4 : i32 to vector<1x8x1xi32>
    %20 = arith.cmpi slt, %18, %19 : vector<1x8x1xi32>
    %21 = arith.andi %16, %20 : vector<1x8x1xi1>
    %cst_5 = arith.constant 0.000000e+00 : f32
    %cst_6 = arith.constant -1.000000e+30 : f32
    %22 = vector.broadcast %cst_5 : f32 to vector<1x8x1xf32>
    %23 = vector.broadcast %cst_6 : f32 to vector<1x8x1xf32>
    %24 = arith.select %21, %22, %23 : vector<1x8x1xi1>, vector<1x8x1xf32>
    %cst_7 = arith.constant 0.000000e+00 : f32
    %25 = vector.broadcast %cst_7 : f32 to vector<1x8x1xf32>
    %c1_i32 = arith.constant 1 : i32
    %26 = vector.broadcast %c1_i32 : i32 to vector<1x8x1xi32>
    %27 = arith.addi %0, %26 : vector<1x8x1xi32>
    %c0_i32_8 = arith.constant 0 : i32
    %28 = vector.broadcast %c0_i32_8 : i32 to vector<1x8x1xi32>
    %29 = arith.cmpi sge, %27, %28 : vector<1x8x1xi32>
    %c1_i32_9 = arith.constant 1 : i32
    %30 = vector.broadcast %c1_i32_9 : i32 to vector<1x8x1xi32>
    %31 = arith.addi %0, %30 : vector<1x8x1xi32>
    %c8_i32_10 = arith.constant 8 : i32
    %32 = vector.broadcast %c8_i32_10 : i32 to vector<1x8x1xi32>
    %33 = arith.cmpi slt, %31, %32 : vector<1x8x1xi32>
    %34 = arith.andi %29, %33 : vector<1x8x1xi1>
    %cst_11 = arith.constant 0.000000e+00 : f32
    %cst_12 = arith.constant -1.000000e+30 : f32
    %35 = vector.broadcast %cst_11 : f32 to vector<1x8x1xf32>
    %36 = vector.broadcast %cst_12 : f32 to vector<1x8x1xf32>
    %37 = arith.select %34, %35, %36 : vector<1x8x1xi1>, vector<1x8x1xf32>
    %c2_i32 = arith.constant 2 : i32
    %38 = vector.broadcast %c2_i32 : i32 to vector<1x8x1xi32>
    %39 = arith.addi %0, %38 : vector<1x8x1xi32>
    %c0_i32_13 = arith.constant 0 : i32
    %40 = vector.broadcast %c0_i32_13 : i32 to vector<1x8x1xi32>
    %41 = arith.cmpi sge, %39, %40 : vector<1x8x1xi32>
    %c2_i32_14 = arith.constant 2 : i32
    %42 = vector.broadcast %c2_i32_14 : i32 to vector<1x8x1xi32>
    %43 = arith.addi %0, %42 : vector<1x8x1xi32>
    %c8_i32_15 = arith.constant 8 : i32
    %44 = vector.broadcast %c8_i32_15 : i32 to vector<1x8x1xi32>
    %45 = arith.cmpi slt, %43, %44 : vector<1x8x1xi32>
    %46 = arith.andi %41, %45 : vector<1x8x1xi1>
    %cst_16 = arith.constant 0.000000e+00 : f32
    %cst_17 = arith.constant -1.000000e+30 : f32
    %47 = vector.broadcast %cst_16 : f32 to vector<1x8x1xf32>
    %48 = vector.broadcast %cst_17 : f32 to vector<1x8x1xf32>
    %49 = arith.select %46, %47, %48 : vector<1x8x1xi1>, vector<1x8x1xf32>
    %50 = tpu.iota {dimensions = array<i32: 0>} : vector<128x128xi32>
    %51 = tpu.iota {dimensions = array<i32: 1>} : vector<128x128xi32>
    %c32_i32 = arith.constant 32 : i32
    %c0_i32_18 = arith.constant 0 : i32
    %52 = arith.cmpi eq, %c32_i32, %c0_i32_18 : i32
    %c1_i32_19 = arith.constant 1 : i32
    %53 = arith.select %52, %c1_i32_19, %c32_i32 : i32
    %54 = vector.broadcast %53 : i32 to vector<128x128xi32>
    %55 = arith.remsi %50, %54 : vector<128x128xi32>
    %c0_i32_20 = arith.constant 0 : i32
    %56 = vector.broadcast %c0_i32_20 : i32 to vector<128x128xi32>
    %57 = arith.cmpi ne, %55, %56 : vector<128x128xi32>
    %c0_i32_21 = arith.constant 0 : i32
    %58 = vector.broadcast %c0_i32_21 : i32 to vector<128x128xi32>
    %59 = arith.cmpi slt, %55, %58 : vector<128x128xi32>
    %c0_i32_22 = arith.constant 0 : i32
    %60 = arith.cmpi slt, %53, %c0_i32_22 : i32
    %61 = vector.broadcast %60 : i1 to vector<128x128xi1>
    %62 = vector.broadcast %61 : vector<128x128xi1> to vector<128x128xi1>
    %63 = arith.xori %59, %62 : vector<128x128xi1>
    %64 = arith.andi %63, %57 : vector<128x128xi1>
    %65 = vector.broadcast %53 : i32 to vector<128x128xi32>
    %66 = arith.addi %55, %65 : vector<128x128xi32>
    %67 = arith.select %64, %66, %55 : vector<128x128xi1>, vector<128x128xi32>
    %68 = arith.cmpi eq, %67, %51 : vector<128x128xi32>
    %cst_23 = arith.constant 2.500000e-01 : f32
    %cst_24 = arith.constant 0.000000e+00 : f32
    %69 = vector.broadcast %cst_23 : f32 to vector<128x128xf32>
    %70 = vector.broadcast %cst_24 : f32 to vector<128x128xf32>
    %71 = arith.select %68, %69, %70 : vector<128x128xi1>, vector<128x128xf32>
    %c0 = arith.constant 0 : index
    %c0_25 = arith.constant 0 : index
    %c0_26 = arith.constant 0 : index
    %72 = vector.load %arg1[%c0, %c0_25, %c0_26] : memref<2x8x128xf32, #tpu.memory_space<vmem>>, vector<2x8x128xf32>
    %73 = vector.shape_cast %72 : vector<2x8x128xf32> to vector<16x128xf32>
    %74 = arith.truncf %73 : vector<16x128xf32> to vector<16x128xbf16>
    %c0_27 = arith.constant 0 : index
    %c0_28 = arith.constant 0 : index
    %c0_29 = arith.constant 0 : index
    %75 = vector.load %arg2[%c0_27, %c0_28, %c0_29] : memref<3x128x384xbf16, #tpu.memory_space<vmem>>, vector<1x128x384xbf16>
    %76 = vector.shape_cast %75 : vector<1x128x384xbf16> to vector<128x384xbf16>
    %cst_30 = arith.constant dense<0.000000e+00> : vector<16x384xf32>
    %77 = tpu.matmul %74, %76, %cst_30 {dimension_numbers = #tpu.dot_dimension_numbers<[1], [0], [0], [1], [0, 0, 1, 1], [], []>} : vector<16x128xbf16>, vector<128x384xbf16>, vector<16x384xf32> -> vector<16x384xf32>
    %78 = vector.shape_cast %77 : vector<16x384xf32> to vector<2x8x384xf32>
    %79 = vector.extract_strided_slice %78 {offsets = [0, 0, 0], sizes = [2, 8, 128], strides = [1, 1, 1]} : vector<2x8x384xf32> to vector<2x8x128xf32>
    %80 = vector.extract_strided_slice %78 {offsets = [0, 0, 128], sizes = [2, 8, 128], strides = [1, 1, 1]} : vector<2x8x384xf32> to vector<2x8x128xf32>
    %81 = vector.extract_strided_slice %78 {offsets = [0, 0, 256], sizes = [2, 8, 128], strides = [1, 1, 1]} : vector<2x8x384xf32> to vector<2x8x128xf32>
    %c2_i32_31 = arith.constant 2 : i32
    %82 = tpu.dynamic_rotate %80 by %c2_i32_31 dim 1 : vector<2x8x128xf32>, i32 -> vector<2x8x128xf32>
    %83 = arith.addf %81, %82 : vector<2x8x128xf32>
    %cst_32 = arith.constant 2.000000e-01 : f32
    %84 = vector.broadcast %cst_32 : f32 to vector<2x8x128xf32>
    %85 = arith.mulf %84, %83 : vector<2x8x128xf32>
    %86 = arith.maximumf %83, %85 : vector<2x8x128xf32>
    %87 = vector.broadcast %12 : vector<1x8x1xf32> to vector<2x8x128xf32>
    %88 = arith.addf %86, %87 : vector<2x8x128xf32>
    %c1_i32_33 = arith.constant 1 : i32
    %89 = tpu.dynamic_rotate %80 by %c1_i32_33 dim 1 : vector<2x8x128xf32>, i32 -> vector<2x8x128xf32>
    %90 = arith.addf %81, %89 : vector<2x8x128xf32>
    %cst_34 = arith.constant 2.000000e-01 : f32
    %91 = vector.broadcast %cst_34 : f32 to vector<2x8x128xf32>
    %92 = arith.mulf %91, %90 : vector<2x8x128xf32>
    %93 = arith.maximumf %90, %92 : vector<2x8x128xf32>
    %94 = vector.broadcast %24 : vector<1x8x1xf32> to vector<2x8x128xf32>
    %95 = arith.addf %93, %94 : vector<2x8x128xf32>
    %96 = arith.maximumf %88, %95 : vector<2x8x128xf32>
    %97 = arith.addf %81, %80 : vector<2x8x128xf32>
    %cst_35 = arith.constant 2.000000e-01 : f32
    %98 = vector.broadcast %cst_35 : f32 to vector<2x8x128xf32>
    %99 = arith.mulf %98, %97 : vector<2x8x128xf32>
    %100 = arith.maximumf %97, %99 : vector<2x8x128xf32>
    %101 = vector.broadcast %25 : vector<1x8x1xf32> to vector<2x8x128xf32>
    %102 = arith.addf %100, %101 : vector<2x8x128xf32>
    %103 = arith.maximumf %96, %102 : vector<2x8x128xf32>
    %c7_i32 = arith.constant 7 : i32
    %104 = tpu.dynamic_rotate %80 by %c7_i32 dim 1 : vector<2x8x128xf32>, i32 -> vector<2x8x128xf32>
    %105 = arith.addf %81, %104 : vector<2x8x128xf32>
    %cst_36 = arith.constant 2.000000e-01 : f32
    %106 = vector.broadcast %cst_36 : f32 to vector<2x8x128xf32>
    %107 = arith.mulf %106, %105 : vector<2x8x128xf32>
    %108 = arith.maximumf %105, %107 : vector<2x8x128xf32>
    %109 = vector.broadcast %37 : vector<1x8x1xf32> to vector<2x8x128xf32>
    %110 = arith.addf %108, %109 : vector<2x8x128xf32>
    %111 = arith.maximumf %103, %110 : vector<2x8x128xf32>
    %c6_i32 = arith.constant 6 : i32
    %112 = tpu.dynamic_rotate %80 by %c6_i32 dim 1 : vector<2x8x128xf32>, i32 -> vector<2x8x128xf32>
    %113 = arith.addf %81, %112 : vector<2x8x128xf32>
    %cst_37 = arith.constant 2.000000e-01 : f32
    %114 = vector.broadcast %cst_37 : f32 to vector<2x8x128xf32>
    %115 = arith.mulf %114, %113 : vector<2x8x128xf32>
    %116 = arith.maximumf %113, %115 : vector<2x8x128xf32>
    %117 = vector.broadcast %49 : vector<1x8x1xf32> to vector<2x8x128xf32>
    %118 = arith.addf %116, %117 : vector<2x8x128xf32>
    %119 = arith.maximumf %111, %118 : vector<2x8x128xf32>
    %cst_38 = arith.constant 0.000000e+00 : f32
    %120 = vector.broadcast %cst_38 : f32 to vector<2x8x128xf32>
    %cst_39 = arith.constant 0.000000e+00 : f32
    %121 = vector.broadcast %cst_39 : f32 to vector<2x8x128xf32>
    %c2_i32_40 = arith.constant 2 : i32
    %122 = tpu.dynamic_rotate %80 by %c2_i32_40 dim 1 : vector<2x8x128xf32>, i32 -> vector<2x8x128xf32>
    %123 = arith.addf %81, %122 : vector<2x8x128xf32>
    %cst_41 = arith.constant 2.000000e-01 : f32
    %124 = vector.broadcast %cst_41 : f32 to vector<2x8x128xf32>
    %125 = arith.mulf %124, %123 : vector<2x8x128xf32>
    %126 = arith.maximumf %123, %125 : vector<2x8x128xf32>
    %127 = vector.broadcast %12 : vector<1x8x1xf32> to vector<2x8x128xf32>
    %128 = arith.addf %126, %127 : vector<2x8x128xf32>
    %129 = arith.subf %128, %119 : vector<2x8x128xf32>
    %130 = math.exp %129 : vector<2x8x128xf32>
    %131 = arith.addf %120, %130 : vector<2x8x128xf32>
    %c2_i32_42 = arith.constant 2 : i32
    %132 = tpu.dynamic_rotate %79 by %c2_i32_42 dim 1 : vector<2x8x128xf32>, i32 -> vector<2x8x128xf32>
    %133 = arith.mulf %130, %132 : vector<2x8x128xf32>
    %134 = arith.addf %121, %133 : vector<2x8x128xf32>
    %c1_i32_43 = arith.constant 1 : i32
    %135 = tpu.dynamic_rotate %80 by %c1_i32_43 dim 1 : vector<2x8x128xf32>, i32 -> vector<2x8x128xf32>
    %136 = arith.addf %81, %135 : vector<2x8x128xf32>
    %cst_44 = arith.constant 2.000000e-01 : f32
    %137 = vector.broadcast %cst_44 : f32 to vector<2x8x128xf32>
    %138 = arith.mulf %137, %136 : vector<2x8x128xf32>
    %139 = arith.maximumf %136, %138 : vector<2x8x128xf32>
    %140 = vector.broadcast %24 : vector<1x8x1xf32> to vector<2x8x128xf32>
    %141 = arith.addf %139, %140 : vector<2x8x128xf32>
    %142 = arith.subf %141, %119 : vector<2x8x128xf32>
    %143 = math.exp %142 : vector<2x8x128xf32>
    %144 = arith.addf %131, %143 : vector<2x8x128xf32>
    %c1_i32_45 = arith.constant 1 : i32
    %145 = tpu.dynamic_rotate %79 by %c1_i32_45 dim 1 : vector<2x8x128xf32>, i32 -> vector<2x8x128xf32>
    %146 = arith.mulf %143, %145 : vector<2x8x128xf32>
    %147 = arith.addf %134, %146 : vector<2x8x128xf32>
    %148 = arith.addf %81, %80 : vector<2x8x128xf32>
    %cst_46 = arith.constant 2.000000e-01 : f32
    %149 = vector.broadcast %cst_46 : f32 to vector<2x8x128xf32>
    %150 = arith.mulf %149, %148 : vector<2x8x128xf32>
    %151 = arith.maximumf %148, %150 : vector<2x8x128xf32>
    %152 = vector.broadcast %25 : vector<1x8x1xf32> to vector<2x8x128xf32>
    %153 = arith.addf %151, %152 : vector<2x8x128xf32>
    %154 = arith.subf %153, %119 : vector<2x8x128xf32>
    %155 = math.exp %154 : vector<2x8x128xf32>
    %156 = arith.addf %144, %155 : vector<2x8x128xf32>
    %157 = arith.mulf %155, %79 : vector<2x8x128xf32>
    %158 = arith.addf %147, %157 : vector<2x8x128xf32>
    %c7_i32_47 = arith.constant 7 : i32
    %159 = tpu.dynamic_rotate %80 by %c7_i32_47 dim 1 : vector<2x8x128xf32>, i32 -> vector<2x8x128xf32>
    %160 = arith.addf %81, %159 : vector<2x8x128xf32>
    %cst_48 = arith.constant 2.000000e-01 : f32
    %161 = vector.broadcast %cst_48 : f32 to vector<2x8x128xf32>
    %162 = arith.mulf %161, %160 : vector<2x8x128xf32>
    %163 = arith.maximumf %160, %162 : vector<2x8x128xf32>
    %164 = vector.broadcast %37 : vector<1x8x1xf32> to vector<2x8x128xf32>
    %165 = arith.addf %163, %164 : vector<2x8x128xf32>
    %166 = arith.subf %165, %119 : vector<2x8x128xf32>
    %167 = math.exp %166 : vector<2x8x128xf32>
    %168 = arith.addf %156, %167 : vector<2x8x128xf32>
    %c7_i32_49 = arith.constant 7 : i32
    %169 = tpu.dynamic_rotate %79 by %c7_i32_49 dim 1 : vector<2x8x128xf32>, i32 -> vector<2x8x128xf32>
    %170 = arith.mulf %167, %169 : vector<2x8x128xf32>
    %171 = arith.addf %158, %170 : vector<2x8x128xf32>
    %c6_i32_50 = arith.constant 6 : i32
    %172 = tpu.dynamic_rotate %80 by %c6_i32_50 dim 1 : vector<2x8x128xf32>, i32 -> vector<2x8x128xf32>
    %173 = arith.addf %81, %172 : vector<2x8x128xf32>
    %cst_51 = arith.constant 2.000000e-01 : f32
    %174 = vector.broadcast %cst_51 : f32 to vector<2x8x128xf32>
    %175 = arith.mulf %174, %173 : vector<2x8x128xf32>
    %176 = arith.maximumf %173, %175 : vector<2x8x128xf32>
    %177 = vector.broadcast %49 : vector<1x8x1xf32> to vector<2x8x128xf32>
    %178 = arith.addf %176, %177 : vector<2x8x128xf32>
    %179 = arith.subf %178, %119 : vector<2x8x128xf32>
    %180 = math.exp %179 : vector<2x8x128xf32>
    %181 = arith.addf %168, %180 : vector<2x8x128xf32>
    %c6_i32_52 = arith.constant 6 : i32
    %182 = tpu.dynamic_rotate %79 by %c6_i32_52 dim 1 : vector<2x8x128xf32>, i32 -> vector<2x8x128xf32>
    %183 = arith.mulf %180, %182 : vector<2x8x128xf32>
    %184 = arith.addf %171, %183 : vector<2x8x128xf32>
    %185 = tpu.reciprocal %181 {approx = true} : vector<2x8x128xf32> -> vector<2x8x128xf32>
    %186 = arith.mulf %184, %185 : vector<2x8x128xf32>
    %187 = vector.shape_cast %186 : vector<2x8x128xf32> to vector<16x128xf32>
    %cst_53 = arith.constant dense<0.000000e+00> : vector<16x128xf32>
    %188 = tpu.matmul %187, %71, %cst_53 {dimension_numbers = #tpu.dot_dimension_numbers<[1], [0], [0], [1], [0, 0, 1, 1], [], []>} : vector<16x128xf32>, vector<128x128xf32>, vector<16x128xf32> -> vector<16x128xf32>
    %189 = vector.shape_cast %188 : vector<16x128xf32> to vector<2x8x128xf32>
    %c0_54 = arith.constant 0 : index
    %c0_55 = arith.constant 0 : index
    %190 = vector.load %arg3[%c0_54, %c0_55] : memref<3x128xf32, #tpu.memory_space<vmem>>, vector<1x128xf32>
    %191 = vector.shape_cast %190 : vector<1x128xf32> to vector<128xf32>
    %192 = vector.shape_cast %191 : vector<128xf32> to vector<1x1x128xf32>
    %193 = vector.broadcast %192 : vector<1x1x128xf32> to vector<2x8x128xf32>
    %194 = arith.addf %189, %193 : vector<2x8x128xf32>
    %195 = arith.addf %194, %72 : vector<2x8x128xf32>
    %cst_56 = arith.constant dense<0.000000e+00> : vector<2x8xf32>
    %196 = vector.multi_reduction <add>, %195, %cst_56 [2] : vector<2x8x128xf32> to vector<2x8xf32>
    %197 = vector.shape_cast %196 : vector<2x8xf32> to vector<2x8x1xf32>
    %cst_57 = arith.constant 3.125000e-02 : f32
    %198 = vector.broadcast %cst_57 : f32 to vector<2x8x1xf32>
    %199 = arith.mulf %197, %198 : vector<2x8x1xf32>
    %200 = arith.mulf %195, %195 : vector<2x8x128xf32>
    %cst_58 = arith.constant dense<0.000000e+00> : vector<2x8xf32>
    %201 = vector.multi_reduction <add>, %200, %cst_58 [2] : vector<2x8x128xf32> to vector<2x8xf32>
    %202 = vector.shape_cast %201 : vector<2x8xf32> to vector<2x8x1xf32>
    %cst_59 = arith.constant 3.125000e-02 : f32
    %203 = vector.broadcast %cst_59 : f32 to vector<2x8x1xf32>
    %204 = arith.mulf %202, %203 : vector<2x8x1xf32>
    %205 = arith.mulf %199, %199 : vector<2x8x1xf32>
    %206 = arith.subf %204, %205 : vector<2x8x1xf32>
    %207 = vector.broadcast %199 : vector<2x8x1xf32> to vector<2x8x128xf32>
    %208 = arith.subf %195, %207 : vector<2x8x128xf32>
    %cst_60 = arith.constant 9.99999974E-6 : f32
    %209 = vector.broadcast %cst_60 : f32 to vector<2x8x1xf32>
    %210 = arith.addf %206, %209 : vector<2x8x1xf32>
    %211 = math.rsqrt %210 : vector<2x8x1xf32>
    %212 = vector.broadcast %211 : vector<2x8x1xf32> to vector<2x8x128xf32>
    %213 = arith.mulf %208, %212 : vector<2x8x128xf32>
    %c0_61 = arith.constant 0 : index
    %c0_62 = arith.constant 0 : index
    %214 = vector.load %arg4[%c0_61, %c0_62] : memref<3x128xf32, #tpu.memory_space<vmem>>, vector<1x128xf32>
    %215 = vector.shape_cast %214 : vector<1x128xf32> to vector<128xf32>
    %216 = vector.shape_cast %215 : vector<128xf32> to vector<1x1x128xf32>
    %217 = vector.broadcast %216 : vector<1x1x128xf32> to vector<2x8x128xf32>
    %218 = arith.mulf %213, %217 : vector<2x8x128xf32>
    %c0_63 = arith.constant 0 : index
    %c0_64 = arith.constant 0 : index
    %219 = vector.load %arg5[%c0_63, %c0_64] : memref<3x128xf32, #tpu.memory_space<vmem>>, vector<1x128xf32>
    %220 = vector.shape_cast %219 : vector<1x128xf32> to vector<128xf32>
    %221 = vector.shape_cast %220 : vector<128xf32> to vector<1x1x128xf32>
    %222 = vector.broadcast %221 : vector<1x1x128xf32> to vector<2x8x128xf32>
    %223 = arith.addf %218, %222 : vector<2x8x128xf32>
    %224 = vector.shape_cast %223 : vector<2x8x128xf32> to vector<16x128xf32>
    %225 = arith.truncf %224 : vector<16x128xf32> to vector<16x128xbf16>
    %c1 = arith.constant 1 : index
    %c0_65 = arith.constant 0 : index
    %c0_66 = arith.constant 0 : index
    %226 = vector.load %arg2[%c1, %c0_65, %c0_66] : memref<3x128x384xbf16, #tpu.memory_space<vmem>>, vector<1x128x384xbf16>
    %227 = vector.shape_cast %226 : vector<1x128x384xbf16> to vector<128x384xbf16>
    %cst_67 = arith.constant dense<0.000000e+00> : vector<16x384xf32>
    %228 = tpu.matmul %225, %227, %cst_67 {dimension_numbers = #tpu.dot_dimension_numbers<[1], [0], [0], [1], [0, 0, 1, 1], [], []>} : vector<16x128xbf16>, vector<128x384xbf16>, vector<16x384xf32> -> vector<16x384xf32>
    %229 = vector.shape_cast %228 : vector<16x384xf32> to vector<2x8x384xf32>
    %230 = vector.extract_strided_slice %229 {offsets = [0, 0, 0], sizes = [2, 8, 128], strides = [1, 1, 1]} : vector<2x8x384xf32> to vector<2x8x128xf32>
    %231 = vector.extract_strided_slice %229 {offsets = [0, 0, 128], sizes = [2, 8, 128], strides = [1, 1, 1]} : vector<2x8x384xf32> to vector<2x8x128xf32>
    %232 = vector.extract_strided_slice %229 {offsets = [0, 0, 256], sizes = [2, 8, 128], strides = [1, 1, 1]} : vector<2x8x384xf32> to vector<2x8x128xf32>
    %c2_i32_68 = arith.constant 2 : i32
    %233 = tpu.dynamic_rotate %231 by %c2_i32_68 dim 1 : vector<2x8x128xf32>, i32 -> vector<2x8x128xf32>
    %234 = arith.addf %232, %233 : vector<2x8x128xf32>
    %cst_69 = arith.constant 2.000000e-01 : f32
    %235 = vector.broadcast %cst_69 : f32 to vector<2x8x128xf32>
    %236 = arith.mulf %235, %234 : vector<2x8x128xf32>
    %237 = arith.maximumf %234, %236 : vector<2x8x128xf32>
    %238 = vector.broadcast %12 : vector<1x8x1xf32> to vector<2x8x128xf32>
    %239 = arith.addf %237, %238 : vector<2x8x128xf32>
    %c1_i32_70 = arith.constant 1 : i32
    %240 = tpu.dynamic_rotate %231 by %c1_i32_70 dim 1 : vector<2x8x128xf32>, i32 -> vector<2x8x128xf32>
    %241 = arith.addf %232, %240 : vector<2x8x128xf32>
    %cst_71 = arith.constant 2.000000e-01 : f32
    %242 = vector.broadcast %cst_71 : f32 to vector<2x8x128xf32>
    %243 = arith.mulf %242, %241 : vector<2x8x128xf32>
    %244 = arith.maximumf %241, %243 : vector<2x8x128xf32>
    %245 = vector.broadcast %24 : vector<1x8x1xf32> to vector<2x8x128xf32>
    %246 = arith.addf %244, %245 : vector<2x8x128xf32>
    %247 = arith.maximumf %239, %246 : vector<2x8x128xf32>
    %248 = arith.addf %232, %231 : vector<2x8x128xf32>
    %cst_72 = arith.constant 2.000000e-01 : f32
    %249 = vector.broadcast %cst_72 : f32 to vector<2x8x128xf32>
    %250 = arith.mulf %249, %248 : vector<2x8x128xf32>
    %251 = arith.maximumf %248, %250 : vector<2x8x128xf32>
    %252 = vector.broadcast %25 : vector<1x8x1xf32> to vector<2x8x128xf32>
    %253 = arith.addf %251, %252 : vector<2x8x128xf32>
    %254 = arith.maximumf %247, %253 : vector<2x8x128xf32>
    %c7_i32_73 = arith.constant 7 : i32
    %255 = tpu.dynamic_rotate %231 by %c7_i32_73 dim 1 : vector<2x8x128xf32>, i32 -> vector<2x8x128xf32>
    %256 = arith.addf %232, %255 : vector<2x8x128xf32>
    %cst_74 = arith.constant 2.000000e-01 : f32
    %257 = vector.broadcast %cst_74 : f32 to vector<2x8x128xf32>
    %258 = arith.mulf %257, %256 : vector<2x8x128xf32>
    %259 = arith.maximumf %256, %258 : vector<2x8x128xf32>
    %260 = vector.broadcast %37 : vector<1x8x1xf32> to vector<2x8x128xf32>
    %261 = arith.addf %259, %260 : vector<2x8x128xf32>
    %262 = arith.maximumf %254, %261 : vector<2x8x128xf32>
    %c6_i32_75 = arith.constant 6 : i32
    %263 = tpu.dynamic_rotate %231 by %c6_i32_75 dim 1 : vector<2x8x128xf32>, i32 -> vector<2x8x128xf32>
    %264 = arith.addf %232, %263 : vector<2x8x128xf32>
    %cst_76 = arith.constant 2.000000e-01 : f32
    %265 = vector.broadcast %cst_76 : f32 to vector<2x8x128xf32>
    %266 = arith.mulf %265, %264 : vector<2x8x128xf32>
    %267 = arith.maximumf %264, %266 : vector<2x8x128xf32>
    %268 = vector.broadcast %49 : vector<1x8x1xf32> to vector<2x8x128xf32>
    %269 = arith.addf %267, %268 : vector<2x8x128xf32>
    %270 = arith.maximumf %262, %269 : vector<2x8x128xf32>
    %cst_77 = arith.constant 0.000000e+00 : f32
    %271 = vector.broadcast %cst_77 : f32 to vector<2x8x128xf32>
    %cst_78 = arith.constant 0.000000e+00 : f32
    %272 = vector.broadcast %cst_78 : f32 to vector<2x8x128xf32>
    %c2_i32_79 = arith.constant 2 : i32
    %273 = tpu.dynamic_rotate %231 by %c2_i32_79 dim 1 : vector<2x8x128xf32>, i32 -> vector<2x8x128xf32>
    %274 = arith.addf %232, %273 : vector<2x8x128xf32>
    %cst_80 = arith.constant 2.000000e-01 : f32
    %275 = vector.broadcast %cst_80 : f32 to vector<2x8x128xf32>
    %276 = arith.mulf %275, %274 : vector<2x8x128xf32>
    %277 = arith.maximumf %274, %276 : vector<2x8x128xf32>
    %278 = vector.broadcast %12 : vector<1x8x1xf32> to vector<2x8x128xf32>
    %279 = arith.addf %277, %278 : vector<2x8x128xf32>
    %280 = arith.subf %279, %270 : vector<2x8x128xf32>
    %281 = math.exp %280 : vector<2x8x128xf32>
    %282 = arith.addf %271, %281 : vector<2x8x128xf32>
    %c2_i32_81 = arith.constant 2 : i32
    %283 = tpu.dynamic_rotate %230 by %c2_i32_81 dim 1 : vector<2x8x128xf32>, i32 -> vector<2x8x128xf32>
    %284 = arith.mulf %281, %283 : vector<2x8x128xf32>
    %285 = arith.addf %272, %284 : vector<2x8x128xf32>
    %c1_i32_82 = arith.constant 1 : i32
    %286 = tpu.dynamic_rotate %231 by %c1_i32_82 dim 1 : vector<2x8x128xf32>, i32 -> vector<2x8x128xf32>
    %287 = arith.addf %232, %286 : vector<2x8x128xf32>
    %cst_83 = arith.constant 2.000000e-01 : f32
    %288 = vector.broadcast %cst_83 : f32 to vector<2x8x128xf32>
    %289 = arith.mulf %288, %287 : vector<2x8x128xf32>
    %290 = arith.maximumf %287, %289 : vector<2x8x128xf32>
    %291 = vector.broadcast %24 : vector<1x8x1xf32> to vector<2x8x128xf32>
    %292 = arith.addf %290, %291 : vector<2x8x128xf32>
    %293 = arith.subf %292, %270 : vector<2x8x128xf32>
    %294 = math.exp %293 : vector<2x8x128xf32>
    %295 = arith.addf %282, %294 : vector<2x8x128xf32>
    %c1_i32_84 = arith.constant 1 : i32
    %296 = tpu.dynamic_rotate %230 by %c1_i32_84 dim 1 : vector<2x8x128xf32>, i32 -> vector<2x8x128xf32>
    %297 = arith.mulf %294, %296 : vector<2x8x128xf32>
    %298 = arith.addf %285, %297 : vector<2x8x128xf32>
    %299 = arith.addf %232, %231 : vector<2x8x128xf32>
    %cst_85 = arith.constant 2.000000e-01 : f32
    %300 = vector.broadcast %cst_85 : f32 to vector<2x8x128xf32>
    %301 = arith.mulf %300, %299 : vector<2x8x128xf32>
    %302 = arith.maximumf %299, %301 : vector<2x8x128xf32>
    %303 = vector.broadcast %25 : vector<1x8x1xf32> to vector<2x8x128xf32>
    %304 = arith.addf %302, %303 : vector<2x8x128xf32>
    %305 = arith.subf %304, %270 : vector<2x8x128xf32>
    %306 = math.exp %305 : vector<2x8x128xf32>
    %307 = arith.addf %295, %306 : vector<2x8x128xf32>
    %308 = arith.mulf %306, %230 : vector<2x8x128xf32>
    %309 = arith.addf %298, %308 : vector<2x8x128xf32>
    %c7_i32_86 = arith.constant 7 : i32
    %310 = tpu.dynamic_rotate %231 by %c7_i32_86 dim 1 : vector<2x8x128xf32>, i32 -> vector<2x8x128xf32>
    %311 = arith.addf %232, %310 : vector<2x8x128xf32>
    %cst_87 = arith.constant 2.000000e-01 : f32
    %312 = vector.broadcast %cst_87 : f32 to vector<2x8x128xf32>
    %313 = arith.mulf %312, %311 : vector<2x8x128xf32>
    %314 = arith.maximumf %311, %313 : vector<2x8x128xf32>
    %315 = vector.broadcast %37 : vector<1x8x1xf32> to vector<2x8x128xf32>
    %316 = arith.addf %314, %315 : vector<2x8x128xf32>
    %317 = arith.subf %316, %270 : vector<2x8x128xf32>
    %318 = math.exp %317 : vector<2x8x128xf32>
    %319 = arith.addf %307, %318 : vector<2x8x128xf32>
    %c7_i32_88 = arith.constant 7 : i32
    %320 = tpu.dynamic_rotate %230 by %c7_i32_88 dim 1 : vector<2x8x128xf32>, i32 -> vector<2x8x128xf32>
    %321 = arith.mulf %318, %320 : vector<2x8x128xf32>
    %322 = arith.addf %309, %321 : vector<2x8x128xf32>
    %c6_i32_89 = arith.constant 6 : i32
    %323 = tpu.dynamic_rotate %231 by %c6_i32_89 dim 1 : vector<2x8x128xf32>, i32 -> vector<2x8x128xf32>
    %324 = arith.addf %232, %323 : vector<2x8x128xf32>
    %cst_90 = arith.constant 2.000000e-01 : f32
    %325 = vector.broadcast %cst_90 : f32 to vector<2x8x128xf32>
    %326 = arith.mulf %325, %324 : vector<2x8x128xf32>
    %327 = arith.maximumf %324, %326 : vector<2x8x128xf32>
    %328 = vector.broadcast %49 : vector<1x8x1xf32> to vector<2x8x128xf32>
    %329 = arith.addf %327, %328 : vector<2x8x128xf32>
    %330 = arith.subf %329, %270 : vector<2x8x128xf32>
    %331 = math.exp %330 : vector<2x8x128xf32>
    %332 = arith.addf %319, %331 : vector<2x8x128xf32>
    %c6_i32_91 = arith.constant 6 : i32
    %333 = tpu.dynamic_rotate %230 by %c6_i32_91 dim 1 : vector<2x8x128xf32>, i32 -> vector<2x8x128xf32>
    %334 = arith.mulf %331, %333 : vector<2x8x128xf32>
    %335 = arith.addf %322, %334 : vector<2x8x128xf32>
    %336 = tpu.reciprocal %332 {approx = true} : vector<2x8x128xf32> -> vector<2x8x128xf32>
    %337 = arith.mulf %335, %336 : vector<2x8x128xf32>
    %338 = vector.shape_cast %337 : vector<2x8x128xf32> to vector<16x128xf32>
    %cst_92 = arith.constant dense<0.000000e+00> : vector<16x128xf32>
    %339 = tpu.matmul %338, %71, %cst_92 {dimension_numbers = #tpu.dot_dimension_numbers<[1], [0], [0], [1], [0, 0, 1, 1], [], []>} : vector<16x128xf32>, vector<128x128xf32>, vector<16x128xf32> -> vector<16x128xf32>
    %340 = vector.shape_cast %339 : vector<16x128xf32> to vector<2x8x128xf32>
    %c1_93 = arith.constant 1 : index
    %c0_94 = arith.constant 0 : index
    %341 = vector.load %arg3[%c1_93, %c0_94] : memref<3x128xf32, #tpu.memory_space<vmem>>, vector<1x128xf32>
    %342 = vector.shape_cast %341 : vector<1x128xf32> to vector<128xf32>
    %343 = vector.shape_cast %342 : vector<128xf32> to vector<1x1x128xf32>
    %344 = vector.broadcast %343 : vector<1x1x128xf32> to vector<2x8x128xf32>
    %345 = arith.addf %340, %344 : vector<2x8x128xf32>
    %346 = arith.addf %345, %223 : vector<2x8x128xf32>
    %cst_95 = arith.constant dense<0.000000e+00> : vector<2x8xf32>
    %347 = vector.multi_reduction <add>, %346, %cst_95 [2] : vector<2x8x128xf32> to vector<2x8xf32>
    %348 = vector.shape_cast %347 : vector<2x8xf32> to vector<2x8x1xf32>
    %cst_96 = arith.constant 3.125000e-02 : f32
    %349 = vector.broadcast %cst_96 : f32 to vector<2x8x1xf32>
    %350 = arith.mulf %348, %349 : vector<2x8x1xf32>
    %351 = arith.mulf %346, %346 : vector<2x8x128xf32>
    %cst_97 = arith.constant dense<0.000000e+00> : vector<2x8xf32>
    %352 = vector.multi_reduction <add>, %351, %cst_97 [2] : vector<2x8x128xf32> to vector<2x8xf32>
    %353 = vector.shape_cast %352 : vector<2x8xf32> to vector<2x8x1xf32>
    %cst_98 = arith.constant 3.125000e-02 : f32
    %354 = vector.broadcast %cst_98 : f32 to vector<2x8x1xf32>
    %355 = arith.mulf %353, %354 : vector<2x8x1xf32>
    %356 = arith.mulf %350, %350 : vector<2x8x1xf32>
    %357 = arith.subf %355, %356 : vector<2x8x1xf32>
    %358 = vector.broadcast %350 : vector<2x8x1xf32> to vector<2x8x128xf32>
    %359 = arith.subf %346, %358 : vector<2x8x128xf32>
    %cst_99 = arith.constant 9.99999974E-6 : f32
    %360 = vector.broadcast %cst_99 : f32 to vector<2x8x1xf32>
    %361 = arith.addf %357, %360 : vector<2x8x1xf32>
    %362 = math.rsqrt %361 : vector<2x8x1xf32>
    %363 = vector.broadcast %362 : vector<2x8x1xf32> to vector<2x8x128xf32>
    %364 = arith.mulf %359, %363 : vector<2x8x128xf32>
    %c1_100 = arith.constant 1 : index
    %c0_101 = arith.constant 0 : index
    %365 = vector.load %arg4[%c1_100, %c0_101] : memref<3x128xf32, #tpu.memory_space<vmem>>, vector<1x128xf32>
    %366 = vector.shape_cast %365 : vector<1x128xf32> to vector<128xf32>
    %367 = vector.shape_cast %366 : vector<128xf32> to vector<1x1x128xf32>
    %368 = vector.broadcast %367 : vector<1x1x128xf32> to vector<2x8x128xf32>
    %369 = arith.mulf %364, %368 : vector<2x8x128xf32>
    %c1_102 = arith.constant 1 : index
    %c0_103 = arith.constant 0 : index
    %370 = vector.load %arg5[%c1_102, %c0_103] : memref<3x128xf32, #tpu.memory_space<vmem>>, vector<1x128xf32>
    %371 = vector.shape_cast %370 : vector<1x128xf32> to vector<128xf32>
    %372 = vector.shape_cast %371 : vector<128xf32> to vector<1x1x128xf32>
    %373 = vector.broadcast %372 : vector<1x1x128xf32> to vector<2x8x128xf32>
    %374 = arith.addf %369, %373 : vector<2x8x128xf32>
    %375 = vector.shape_cast %374 : vector<2x8x128xf32> to vector<16x128xf32>
    %376 = arith.truncf %375 : vector<16x128xf32> to vector<16x128xbf16>
    %c2 = arith.constant 2 : index
    %c0_104 = arith.constant 0 : index
    %c0_105 = arith.constant 0 : index
    %377 = vector.load %arg2[%c2, %c0_104, %c0_105] : memref<3x128x384xbf16, #tpu.memory_space<vmem>>, vector<1x128x384xbf16>
    %378 = vector.shape_cast %377 : vector<1x128x384xbf16> to vector<128x384xbf16>
    %cst_106 = arith.constant dense<0.000000e+00> : vector<16x384xf32>
    %379 = tpu.matmul %376, %378, %cst_106 {dimension_numbers = #tpu.dot_dimension_numbers<[1], [0], [0], [1], [0, 0, 1, 1], [], []>} : vector<16x128xbf16>, vector<128x384xbf16>, vector<16x384xf32> -> vector<16x384xf32>
    %380 = vector.shape_cast %379 : vector<16x384xf32> to vector<2x8x384xf32>
    %381 = vector.extract_strided_slice %380 {offsets = [0, 0, 0], sizes = [2, 8, 128], strides = [1, 1, 1]} : vector<2x8x384xf32> to vector<2x8x128xf32>
    %382 = vector.extract_strided_slice %380 {offsets = [0, 0, 128], sizes = [2, 8, 128], strides = [1, 1, 1]} : vector<2x8x384xf32> to vector<2x8x128xf32>
    %383 = vector.extract_strided_slice %380 {offsets = [0, 0, 256], sizes = [2, 8, 128], strides = [1, 1, 1]} : vector<2x8x384xf32> to vector<2x8x128xf32>
    %c2_i32_107 = arith.constant 2 : i32
    %384 = tpu.dynamic_rotate %382 by %c2_i32_107 dim 1 : vector<2x8x128xf32>, i32 -> vector<2x8x128xf32>
    %385 = arith.addf %383, %384 : vector<2x8x128xf32>
    %cst_108 = arith.constant 2.000000e-01 : f32
    %386 = vector.broadcast %cst_108 : f32 to vector<2x8x128xf32>
    %387 = arith.mulf %386, %385 : vector<2x8x128xf32>
    %388 = arith.maximumf %385, %387 : vector<2x8x128xf32>
    %389 = vector.broadcast %12 : vector<1x8x1xf32> to vector<2x8x128xf32>
    %390 = arith.addf %388, %389 : vector<2x8x128xf32>
    %c1_i32_109 = arith.constant 1 : i32
    %391 = tpu.dynamic_rotate %382 by %c1_i32_109 dim 1 : vector<2x8x128xf32>, i32 -> vector<2x8x128xf32>
    %392 = arith.addf %383, %391 : vector<2x8x128xf32>
    %cst_110 = arith.constant 2.000000e-01 : f32
    %393 = vector.broadcast %cst_110 : f32 to vector<2x8x128xf32>
    %394 = arith.mulf %393, %392 : vector<2x8x128xf32>
    %395 = arith.maximumf %392, %394 : vector<2x8x128xf32>
    %396 = vector.broadcast %24 : vector<1x8x1xf32> to vector<2x8x128xf32>
    %397 = arith.addf %395, %396 : vector<2x8x128xf32>
    %398 = arith.maximumf %390, %397 : vector<2x8x128xf32>
    %399 = arith.addf %383, %382 : vector<2x8x128xf32>
    %cst_111 = arith.constant 2.000000e-01 : f32
    %400 = vector.broadcast %cst_111 : f32 to vector<2x8x128xf32>
    %401 = arith.mulf %400, %399 : vector<2x8x128xf32>
    %402 = arith.maximumf %399, %401 : vector<2x8x128xf32>
    %403 = vector.broadcast %25 : vector<1x8x1xf32> to vector<2x8x128xf32>
    %404 = arith.addf %402, %403 : vector<2x8x128xf32>
    %405 = arith.maximumf %398, %404 : vector<2x8x128xf32>
    %c7_i32_112 = arith.constant 7 : i32
    %406 = tpu.dynamic_rotate %382 by %c7_i32_112 dim 1 : vector<2x8x128xf32>, i32 -> vector<2x8x128xf32>
    %407 = arith.addf %383, %406 : vector<2x8x128xf32>
    %cst_113 = arith.constant 2.000000e-01 : f32
    %408 = vector.broadcast %cst_113 : f32 to vector<2x8x128xf32>
    %409 = arith.mulf %408, %407 : vector<2x8x128xf32>
    %410 = arith.maximumf %407, %409 : vector<2x8x128xf32>
    %411 = vector.broadcast %37 : vector<1x8x1xf32> to vector<2x8x128xf32>
    %412 = arith.addf %410, %411 : vector<2x8x128xf32>
    %413 = arith.maximumf %405, %412 : vector<2x8x128xf32>
    %c6_i32_114 = arith.constant 6 : i32
    %414 = tpu.dynamic_rotate %382 by %c6_i32_114 dim 1 : vector<2x8x128xf32>, i32 -> vector<2x8x128xf32>
    %415 = arith.addf %383, %414 : vector<2x8x128xf32>
    %cst_115 = arith.constant 2.000000e-01 : f32
    %416 = vector.broadcast %cst_115 : f32 to vector<2x8x128xf32>
    %417 = arith.mulf %416, %415 : vector<2x8x128xf32>
    %418 = arith.maximumf %415, %417 : vector<2x8x128xf32>
    %419 = vector.broadcast %49 : vector<1x8x1xf32> to vector<2x8x128xf32>
    %420 = arith.addf %418, %419 : vector<2x8x128xf32>
    %421 = arith.maximumf %413, %420 : vector<2x8x128xf32>
    %cst_116 = arith.constant 0.000000e+00 : f32
    %422 = vector.broadcast %cst_116 : f32 to vector<2x8x128xf32>
    %cst_117 = arith.constant 0.000000e+00 : f32
    %423 = vector.broadcast %cst_117 : f32 to vector<2x8x128xf32>
    %c2_i32_118 = arith.constant 2 : i32
    %424 = tpu.dynamic_rotate %382 by %c2_i32_118 dim 1 : vector<2x8x128xf32>, i32 -> vector<2x8x128xf32>
    %425 = arith.addf %383, %424 : vector<2x8x128xf32>
    %cst_119 = arith.constant 2.000000e-01 : f32
    %426 = vector.broadcast %cst_119 : f32 to vector<2x8x128xf32>
    %427 = arith.mulf %426, %425 : vector<2x8x128xf32>
    %428 = arith.maximumf %425, %427 : vector<2x8x128xf32>
    %429 = vector.broadcast %12 : vector<1x8x1xf32> to vector<2x8x128xf32>
    %430 = arith.addf %428, %429 : vector<2x8x128xf32>
    %431 = arith.subf %430, %421 : vector<2x8x128xf32>
    %432 = math.exp %431 : vector<2x8x128xf32>
    %433 = arith.addf %422, %432 : vector<2x8x128xf32>
    %c2_i32_120 = arith.constant 2 : i32
    %434 = tpu.dynamic_rotate %381 by %c2_i32_120 dim 1 : vector<2x8x128xf32>, i32 -> vector<2x8x128xf32>
    %435 = arith.mulf %432, %434 : vector<2x8x128xf32>
    %436 = arith.addf %423, %435 : vector<2x8x128xf32>
    %c1_i32_121 = arith.constant 1 : i32
    %437 = tpu.dynamic_rotate %382 by %c1_i32_121 dim 1 : vector<2x8x128xf32>, i32 -> vector<2x8x128xf32>
    %438 = arith.addf %383, %437 : vector<2x8x128xf32>
    %cst_122 = arith.constant 2.000000e-01 : f32
    %439 = vector.broadcast %cst_122 : f32 to vector<2x8x128xf32>
    %440 = arith.mulf %439, %438 : vector<2x8x128xf32>
    %441 = arith.maximumf %438, %440 : vector<2x8x128xf32>
    %442 = vector.broadcast %24 : vector<1x8x1xf32> to vector<2x8x128xf32>
    %443 = arith.addf %441, %442 : vector<2x8x128xf32>
    %444 = arith.subf %443, %421 : vector<2x8x128xf32>
    %445 = math.exp %444 : vector<2x8x128xf32>
    %446 = arith.addf %433, %445 : vector<2x8x128xf32>
    %c1_i32_123 = arith.constant 1 : i32
    %447 = tpu.dynamic_rotate %381 by %c1_i32_123 dim 1 : vector<2x8x128xf32>, i32 -> vector<2x8x128xf32>
    %448 = arith.mulf %445, %447 : vector<2x8x128xf32>
    %449 = arith.addf %436, %448 : vector<2x8x128xf32>
    %450 = arith.addf %383, %382 : vector<2x8x128xf32>
    %cst_124 = arith.constant 2.000000e-01 : f32
    %451 = vector.broadcast %cst_124 : f32 to vector<2x8x128xf32>
    %452 = arith.mulf %451, %450 : vector<2x8x128xf32>
    %453 = arith.maximumf %450, %452 : vector<2x8x128xf32>
    %454 = vector.broadcast %25 : vector<1x8x1xf32> to vector<2x8x128xf32>
    %455 = arith.addf %453, %454 : vector<2x8x128xf32>
    %456 = arith.subf %455, %421 : vector<2x8x128xf32>
    %457 = math.exp %456 : vector<2x8x128xf32>
    %458 = arith.addf %446, %457 : vector<2x8x128xf32>
    %459 = arith.mulf %457, %381 : vector<2x8x128xf32>
    %460 = arith.addf %449, %459 : vector<2x8x128xf32>
    %c7_i32_125 = arith.constant 7 : i32
    %461 = tpu.dynamic_rotate %382 by %c7_i32_125 dim 1 : vector<2x8x128xf32>, i32 -> vector<2x8x128xf32>
    %462 = arith.addf %383, %461 : vector<2x8x128xf32>
    %cst_126 = arith.constant 2.000000e-01 : f32
    %463 = vector.broadcast %cst_126 : f32 to vector<2x8x128xf32>
    %464 = arith.mulf %463, %462 : vector<2x8x128xf32>
    %465 = arith.maximumf %462, %464 : vector<2x8x128xf32>
    %466 = vector.broadcast %37 : vector<1x8x1xf32> to vector<2x8x128xf32>
    %467 = arith.addf %465, %466 : vector<2x8x128xf32>
    %468 = arith.subf %467, %421 : vector<2x8x128xf32>
    %469 = math.exp %468 : vector<2x8x128xf32>
    %470 = arith.addf %458, %469 : vector<2x8x128xf32>
    %c7_i32_127 = arith.constant 7 : i32
    %471 = tpu.dynamic_rotate %381 by %c7_i32_127 dim 1 : vector<2x8x128xf32>, i32 -> vector<2x8x128xf32>
    %472 = arith.mulf %469, %471 : vector<2x8x128xf32>
    %473 = arith.addf %460, %472 : vector<2x8x128xf32>
    %c6_i32_128 = arith.constant 6 : i32
    %474 = tpu.dynamic_rotate %382 by %c6_i32_128 dim 1 : vector<2x8x128xf32>, i32 -> vector<2x8x128xf32>
    %475 = arith.addf %383, %474 : vector<2x8x128xf32>
    %cst_129 = arith.constant 2.000000e-01 : f32
    %476 = vector.broadcast %cst_129 : f32 to vector<2x8x128xf32>
    %477 = arith.mulf %476, %475 : vector<2x8x128xf32>
    %478 = arith.maximumf %475, %477 : vector<2x8x128xf32>
    %479 = vector.broadcast %49 : vector<1x8x1xf32> to vector<2x8x128xf32>
    %480 = arith.addf %478, %479 : vector<2x8x128xf32>
    %481 = arith.subf %480, %421 : vector<2x8x128xf32>
    %482 = math.exp %481 : vector<2x8x128xf32>
    %483 = arith.addf %470, %482 : vector<2x8x128xf32>
    %c6_i32_130 = arith.constant 6 : i32
    %484 = tpu.dynamic_rotate %381 by %c6_i32_130 dim 1 : vector<2x8x128xf32>, i32 -> vector<2x8x128xf32>
    %485 = arith.mulf %482, %484 : vector<2x8x128xf32>
    %486 = arith.addf %473, %485 : vector<2x8x128xf32>
    %487 = tpu.reciprocal %483 {approx = true} : vector<2x8x128xf32> -> vector<2x8x128xf32>
    %488 = arith.mulf %486, %487 : vector<2x8x128xf32>
    %489 = vector.shape_cast %488 : vector<2x8x128xf32> to vector<16x128xf32>
    %cst_131 = arith.constant dense<0.000000e+00> : vector<16x128xf32>
    %490 = tpu.matmul %489, %71, %cst_131 {dimension_numbers = #tpu.dot_dimension_numbers<[1], [0], [0], [1], [0, 0, 1, 1], [], []>} : vector<16x128xf32>, vector<128x128xf32>, vector<16x128xf32> -> vector<16x128xf32>
    %491 = vector.shape_cast %490 : vector<16x128xf32> to vector<2x8x128xf32>
    %c2_132 = arith.constant 2 : index
    %c0_133 = arith.constant 0 : index
    %492 = vector.load %arg3[%c2_132, %c0_133] : memref<3x128xf32, #tpu.memory_space<vmem>>, vector<1x128xf32>
    %493 = vector.shape_cast %492 : vector<1x128xf32> to vector<128xf32>
    %494 = vector.shape_cast %493 : vector<128xf32> to vector<1x1x128xf32>
    %495 = vector.broadcast %494 : vector<1x1x128xf32> to vector<2x8x128xf32>
    %496 = arith.addf %491, %495 : vector<2x8x128xf32>
    %497 = arith.addf %496, %374 : vector<2x8x128xf32>
    %cst_134 = arith.constant dense<0.000000e+00> : vector<2x8xf32>
    %498 = vector.multi_reduction <add>, %497, %cst_134 [2] : vector<2x8x128xf32> to vector<2x8xf32>
    %499 = vector.shape_cast %498 : vector<2x8xf32> to vector<2x8x1xf32>
    %cst_135 = arith.constant 3.125000e-02 : f32
    %500 = vector.broadcast %cst_135 : f32 to vector<2x8x1xf32>
    %501 = arith.mulf %499, %500 : vector<2x8x1xf32>
    %502 = arith.mulf %497, %497 : vector<2x8x128xf32>
    %cst_136 = arith.constant dense<0.000000e+00> : vector<2x8xf32>
    %503 = vector.multi_reduction <add>, %502, %cst_136 [2] : vector<2x8x128xf32> to vector<2x8xf32>
    %504 = vector.shape_cast %503 : vector<2x8xf32> to vector<2x8x1xf32>
    %cst_137 = arith.constant 3.125000e-02 : f32
    %505 = vector.broadcast %cst_137 : f32 to vector<2x8x1xf32>
    %506 = arith.mulf %504, %505 : vector<2x8x1xf32>
    %507 = arith.mulf %501, %501 : vector<2x8x1xf32>
    %508 = arith.subf %506, %507 : vector<2x8x1xf32>
    %509 = vector.broadcast %501 : vector<2x8x1xf32> to vector<2x8x128xf32>
    %510 = arith.subf %497, %509 : vector<2x8x128xf32>
    %cst_138 = arith.constant 9.99999974E-6 : f32
    %511 = vector.broadcast %cst_138 : f32 to vector<2x8x1xf32>
    %512 = arith.addf %508, %511 : vector<2x8x1xf32>
    %513 = math.rsqrt %512 : vector<2x8x1xf32>
    %514 = vector.broadcast %513 : vector<2x8x1xf32> to vector<2x8x128xf32>
    %515 = arith.mulf %510, %514 : vector<2x8x128xf32>
    %c2_139 = arith.constant 2 : index
    %c0_140 = arith.constant 0 : index
    %516 = vector.load %arg4[%c2_139, %c0_140] : memref<3x128xf32, #tpu.memory_space<vmem>>, vector<1x128xf32>
    %517 = vector.shape_cast %516 : vector<1x128xf32> to vector<128xf32>
    %518 = vector.shape_cast %517 : vector<128xf32> to vector<1x1x128xf32>
    %519 = vector.broadcast %518 : vector<1x1x128xf32> to vector<2x8x128xf32>
    %520 = arith.mulf %515, %519 : vector<2x8x128xf32>
    %c2_141 = arith.constant 2 : index
    %c0_142 = arith.constant 0 : index
    %521 = vector.load %arg5[%c2_141, %c0_142] : memref<3x128xf32, #tpu.memory_space<vmem>>, vector<1x128xf32>
    %522 = vector.shape_cast %521 : vector<1x128xf32> to vector<128xf32>
    %523 = vector.shape_cast %522 : vector<128xf32> to vector<1x1x128xf32>
    %524 = vector.broadcast %523 : vector<1x1x128xf32> to vector<2x8x128xf32>
    %525 = arith.addf %520, %524 : vector<2x8x128xf32>
    %c0_143 = arith.constant 0 : index
    %c0_144 = arith.constant 0 : index
    %c0_145 = arith.constant 0 : index
    %526 = vector.load %arg6[%c0_143, %c0_144, %c0_145] : memref<2x8x128xf32, #tpu.memory_space<vmem>>, vector<2x8x128xf32>
    tpu.vector_store %arg6[%c0_143, %c0_144, %c0_145], %525 {strides = array<i32>} : memref<2x8x128xf32, #tpu.memory_space<vmem>>, vector<2x8x128xf32>,
    return
  }
  func.func @transform_0(%arg0: i32) -> (i32, i32, i32) {
    %c0_i32 = arith.constant 0 : i32
    %c0_i32_0 = arith.constant 0 : i32
    %c0_i32_1 = arith.constant 0 : i32
    return %arg0, %c0_i32, %c0_i32_0 : i32, i32, i32
  }
  func.func @transform_1(%arg0: i32) -> (i32, i32, i32) {
    %c0_i32 = arith.constant 0 : i32
    %c0_i32_0 = arith.constant 0 : i32
    %c0_i32_1 = arith.constant 0 : i32
    %c0_i32_2 = arith.constant 0 : i32
    return %c0_i32, %c0_i32_0, %c0_i32_1 : i32, i32, i32
  }
  func.func @transform_2(%arg0: i32) -> (i32, i32) {
    %c0_i32 = arith.constant 0 : i32
    %c0_i32_0 = arith.constant 0 : i32
    %c0_i32_1 = arith.constant 0 : i32
    return %c0_i32, %c0_i32_0 : i32, i32
  }
  func.func @transform_3(%arg0: i32) -> (i32, i32) {
    %c0_i32 = arith.constant 0 : i32
    %c0_i32_0 = arith.constant 0 : i32
    %c0_i32_1 = arith.constant 0 : i32
    return %c0_i32, %c0_i32_0 : i32, i32
  }
  func.func @transform_4(%arg0: i32) -> (i32, i32) {
    %c0_i32 = arith.constant 0 : i32
    %c0_i32_0 = arith.constant 0 : i32
    %c0_i32_1 = arith.constant 0 : i32
    return %c0_i32, %c0_i32_0 : i32, i32
  }
  func.func @transform_5(%arg0: i32) -> (i32, i32, i32) {
    %c0_i32 = arith.constant 0 : i32
    %c0_i32_0 = arith.constant 0 : i32
    %c0_i32_1 = arith.constant 0 : i32
    return %arg0, %c0_i32, %c0_i32_0 : i32, i32, i32
  }
}

</mosaic_0001>

<bundles_post_ra>
// kernel: text_encoder.1
= control target key start
LH: loop header
LB: loop body
LE: loop exit
PB: predicated region body
PF: predicated region fallthrough
CT: control target
= control target key end

     0   :  { %s2982_s0 = inlined_call_operand.vmem [shape: f32[2,8,128], index: 0, kind: input, shape index: {}]   ;;  %s2983_s1 = inlined_call_operand.vmem [shape: bf16[3,128,384], index: 1, kind: input, shape index: {}]   ;;  %s2984_s2 = inlined_call_operand.vmem [shape: f32[3,128], index: 2, kind: input, shape index: {}]   ;;  %s2985_s3 = inlined_call_operand.vmem [shape: f32[3,128], index: 3, kind: input, shape index: {}]   ;;  %s2986_s4 = inlined_call_operand.vmem [shape: f32[3,128], index: 4, kind: input, shape index: {}]   ;;  %s2987_s5 = inlined_call_operand.hbm [shape: f32[2,8,128], index: 5, kind: output, shape index: {}]  }
   0x1   :  { %v1965_v0 = vld [vmem:[%s2983_s1 + $0xac] sm:$0xf]  ;;  %v1632_v1 = vld [vmem:[%s2983_s1 + $0xb4] sm:$0xf0]  ;;  %v1638_v2 = vld [vmem:[%s2983_s1 + $0xb0] sm:$0xf] }
   0x2   :  { %v1635_v3 = vor.u32 %v1965_v0, %v1632_v1  ;;  %v1967_v4 = vld [vmem:[%s2983_s1 + $0xb8] sm:$0xf0]  ;;  %v1962_v5 = vld [vmem:[%s2983_s1 + $0x94] sm:$0xf]  ;;  %v1620_v6 = vld [vmem:[%s2983_s1 + $0x9c] sm:$0xf0] }
   0x3   :  { %v1639_v7 = vor.u32 %v1967_v4, %v1638_v2  ;;  %v1626_v8 = vld [vmem:[%s2983_s1 + $0x98] sm:$0xf]  ;;  %v1964_v9 = vld [vmem:[%s2983_s1 + $0xa0] sm:$0xf0]  ;;  %v1623_v10 = vor.u32 %v1962_v5, %v1620_v6  ;;  %v1959_v12 = vld [vmem:[%s2983_s1 + $0x7c] sm:$0xf] }
   0x4   :  { %461 = vmatpush.bf16.msra.mxu1 %v1635_v3  ;;  %v1627_v11 = vor.u32 %v1964_v9, %v1626_v8  ;;  %v1608_v13 = vld [vmem:[%s2983_s1 + $0x84] sm:$0xf0]  ;;  %v1614_v14 = vld [vmem:[%s2983_s1 + $0x80] sm:$0xf]  ;;  %v1961_v15 = vld [vmem:[%s2983_s1 + $0x88] sm:$0xf0] }
   0x5   :  { %475 = vmatpush.bf16.msra.mxu2 %v1639_v7  ;;  %v1611_v16 = vor.u32 %v1959_v12, %v1608_v13  ;;  %v1615_v17 = vor.u32 %v1961_v15, %v1614_v14  ;;  %v1956_v18 = vld [vmem:[%s2983_s1 + $0x64] sm:$0xf]  ;;  %v1596_v19 = vld [vmem:[%s2983_s1 + $0x6c] sm:$0xf0]  ;;  %v1602_v20 = vld [vmem:[%s2983_s1 + $0x68] sm:$0xf] }
   0x6   :  { %v1958_v21 = vld [vmem:[%s2983_s1 + $0x70] sm:$0xf0]  ;;  %v1630_v22 = vld [vmem:[%s2983_s1 + $0xa8] sm:$0xf]  ;;  %v1599_v25 = vor.u32 %v1956_v18, %v1596_v19  ;;  %v1953_v26 = vld [vmem:[%s2983_s1 + $0x4c] sm:$0xf] }
   0x7   :  { %v1966_v23 = vld [vmem:[%s2983_s1 + $0xb0] sm:$0xf0]  ;;  %v1584_v27 = vld [vmem:[%s2983_s1 + $0x54] sm:$0xf0]  ;;  %v1603_v28 = vor.u32 %v1958_v21, %v1602_v20  ;;  %v1590_v29 = vld [vmem:[%s2983_s1 + $0x50] sm:$0xf] }
   0x8   :  { %462 = vmatpush.bf16.msra.mxu1 %v1623_v10  ;;  %v1631_v24 = vor.u32 %v1966_v23, %v1630_v22  ;;  %v1618_v30 = vld [vmem:[%s2983_s1 + $0x90] sm:$0xf]  ;;  %v1963_v31 = vld [vmem:[%s2983_s1 + $0x98] sm:$0xf0]  ;;  %v1606_v34 = vld [vmem:[%s2983_s1 + $0x78] sm:$0xf]  ;;  %v1587_v37 = vor.u32 %v1953_v26, %v1584_v27 }
   0x9   :  { %476 = vmatpush.bf16.msra.mxu2 %v1627_v11  ;;  %v1955_v32 = vld [vmem:[%s2983_s1 + $0x58] sm:$0xf0]  ;;  %v1619_v33 = vor.u32 %v1963_v31, %v1618_v30  ;;  %v1960_v35 = vld [vmem:[%s2983_s1 + $0x80] sm:$0xf0]  ;;  %v1950_v36 = vld [vmem:[%s2983_s1 + $0x34] sm:$0xf] }
   0xa   :  { %447 = vmatpush.bf16.msra.mxu0 %v1631_v24  ;;  %v1572_v38 = vld [vmem:[%s2983_s1 + $0x3c] sm:$0xf0]  ;;  %v1578_v39 = vld [vmem:[%s2983_s1 + $0x38] sm:$0xf]  ;;  %v1952_v40 = vld [vmem:[%s2983_s1 + $0x40] sm:$0xf0]  ;;  %v1591_v41 = vor.u32 %v1955_v32, %v1590_v29  ;;  %v1607_v42 = vor.u32 %v1960_v35, %v1606_v34 }
   0xb   :  { %v1594_v43 = vld [vmem:[%s2983_s1 + $0x60] sm:$0xf]  ;;  %v1957_v44 = vld [vmem:[%s2983_s1 + $0x68] sm:$0xf0]  ;;  %v1575_v45 = vor.u32 %v1950_v36, %v1572_v38 }
   0xc   :  { %463 = vmatpush.bf16.msra.mxu1 %v1611_v16 }
   0xd   :  { %477 = vmatpush.bf16.msra.mxu2 %v1615_v17 }
   0xe   :  { %448 = vmatpush.bf16.msra.mxu0 %v1619_v33 }
  0x10   :  { %464 = vmatpush.bf16.msra.mxu1 %v1599_v25 }
  0x11   :  { %478 = vmatpush.bf16.msra.mxu2 %v1603_v28 }
  0x14   :  { %465 = vmatpush.bf16.msra.mxu1 %v1587_v37 }
  0x15   :  { %10 = vsyncpa [#allocation3], 0  ;;  %479 = vmatpush.bf16.msra.mxu2 %v1591_v41  ;;  %v1579_v46 = vor.u32 %v1952_v40, %v1578_v39  ;;  %v1947_v47 = vld [vmem:[%s2983_s1 + $0x1c] sm:$0xf]  ;;  %v1560_v48 = vld [vmem:[%s2983_s1 + $0x24] sm:$0xf0]  ;;  %449 = vmatpush.bf16.msra.mxu0 %v1607_v42  ;;  %v1595_v50 = vor.u32 %v1957_v44, %v1594_v43  ;;  %v21_v11 = vlaneseq }
  0x16   :  { %v1566_v49 = vld [vmem:[%s2983_s1 + $0x20] sm:$0xf]  ;;  %v1949_v51 = vld [vmem:[%s2983_s1 + $0x28] sm:$0xf0]  ;;  %v1582_v52 = vld [vmem:[%s2983_s1 + $0x48] sm:$0xf]  ;;  %v1563_v54 = vor.u32 %v1947_v47, %v1560_v48 }
  0x17   :  { %v1954_v53 = vld [vmem:[%s2983_s1 + $0x50] sm:$0xf0]  ;;  %v1567_v55 = vor.u32 %v1949_v51, %v1566_v49  ;;  %v1944_v56 = vld [vmem:[%s2983_s1 + $0x4] sm:$0xf]  ;;  %v1548_v57 = vld [vmem:[%s2983_s1 + $0xc] sm:$0xf0] }
  0x18   :  { %466 = vmatpush.bf16.msra.mxu1 %v1575_v45  ;;  %v1554_v58 = vld [vmem:[%s2983_s1 + $0x8] sm:$0xf]  ;;  %v1583_v59 = vor.u32 %v1954_v53, %v1582_v52  ;;  %v1946_v60 = vld [vmem:[%s2983_s1 + $0x10] sm:$0xf0]  ;;  %v1570_v61 = vld [vmem:[%s2983_s1 + $0x30] sm:$0xf]  ;;  %v1551_v63 = vor.u32 %v1944_v56, %v1548_v57 }
  0x19   :  { %480 = vmatpush.bf16.msra.mxu2 %v1579_v46  ;;  %450 = vmatpush.bf16.msra.mxu0 %v1595_v50  ;;  %v1951_v62 = vld [vmem:[%s2983_s1 + $0x38] sm:$0xf0]  ;;  %v2310_v0 = vld [vmem:[%s2982_s0] sm:$0xff]  ;;  %v2315_v1 = vld [vmem:[%s2982_s0 + $0x8] sm:$0xff]  ;;  %v1555_v2 = vor.u32 %v1946_v60, %v1554_v58  ;;  %v2331_v12 = vshrl.u32 %v21_v11, 7  ;;  %v2334_v14 = vand.u32 127, %v21_v11 }
  0x1a   :  { %v1571_v3 = vor.u32 %v1951_v62, %v1570_v61  ;;  %v1558_v4 = vld [vmem:[%s2983_s1 + $0x18] sm:$0xf]  ;;  %v1948_v5 = vld [vmem:[%s2983_s1 + $0x20] sm:$0xf0]  ;;  %v286_v6 = vpack.c.bf16 %v2315_v1, %v2310_v0  ;;  %v1546_v8 = vld [vmem:[%s2983_s1] sm:$0xf] }
  0x1b   :  { %v1559_v7 = vor.u32 %v1948_v5, %v1558_v4  ;;  %v1945_v9 = vld [vmem:[%s2983_s1 + $0x8] sm:$0xf0]  ;;  %v57_v13 = vadd.s32 120, %v2331_v12  ;;  %v56_v16 = vadd.s32 112, %v2331_v12  ;;  %v55_v19 = vadd.s32 104, %v2331_v12  ;;  %s1532_s20 = sshll.u32 %s2987_s5, 4  ;;  %s1533_s20 = int_to_ptr.hbm [resolvable:$true] %s1532_s20 }
  0x1c   :  { %467 = vmatpush.bf16.msra.mxu1 %v1563_v54  ;;  %v1547_v10 = vor.u32 %v1945_v9, %v1546_v8  ;;  %v2140_v20 = vmov 0.25   ;;  %v54_v23 = vadd.s32 96, %v2331_v12  ;;  %v53_v26 = vadd.s32 88, %v2331_v12  ;;  %v2021_v17 = vld [vmem:[%s2984_s2] ss:$0 sm:$0xff]  ;;  %s2144_s21 = smov 8  }
  0x1d   :  { %481 = vmatpush.bf16.msra.mxu2 %v1567_v55  ;;  %451 = vmatpush.bf16.msra.mxu0 %v1583_v59  ;;  %v169_v15 = vand.u32 31, %v57_v13  ;;  %v162_v18 = vand.u32 31, %v56_v16  ;;  %v155_v22 = vand.u32 31, %v55_v19  ;;  %v52_v29 = vadd.s32 80, %v2331_v12  ;;  %v1990_v54 = vld [vmem:[%s2983_s1 + $0x170] sm:$0xf0] }
  0x1e   :  { %v148_v25 = vand.u32 31, %v54_v23  ;;  %v141_v28 = vand.u32 31, %v53_v26  ;;  %v23_v30 = vadd.s32 4294967294, %v2331_v12  ;;  %v51_v33 = vadd.s32 72, %v2331_v12 }
  0x1f   :  { %vm2338_vm0 = vcmp.eq.s32.totalorder %v169_v15, %v2334_v14  ;;  %vm2347_vm1 = vcmp.eq.s32.totalorder %v162_v18, %v2334_v14  ;;  %vm2356_vm2 = vcmp.eq.s32.totalorder %v155_v22, %v2334_v14  ;;  %v134_v32 = vand.u32 31, %v52_v29 }
  0x20   :  { %468 = vmatpush.bf16.msra.mxu1 %v1551_v63  ;;  %1640 = vmatpush.msk.msra.mxu3 %vm2338_vm0, %v2140_v20  ;;  %vm2365_vm3 = vcmp.eq.s32.totalorder %v148_v25, %v2334_v14  ;;  %vm2375_vm4 = vcmp.eq.s32.totalorder %v141_v28, %v2334_v14  ;;  %v28_v35 = vadd.s32 4294967295, %v2331_v12  ;;  %v33_v36 = vadd.s32 1, %v2331_v12 }
  0x21   :  { %482 = vmatpush.bf16.msra.mxu2 %v1555_v2  ;;  %452 = vmatpush.bf16.msra.mxu0 %v1571_v3  ;;  %vm2386_vm5 = vcmp.eq.s32.totalorder %v134_v32, %v2334_v14  ;;  %v127_v38 = vand.u32 31, %v51_v33  ;;  %v50_v39 = vadd.s32 64, %v2331_v12  ;;  %vm24_vm6 = vcmp.ge.s32.totalorder %v23_v30, 0 }
  0x22   :  { %1641 = vmatpush.msk.msra.mxu3 %vm2347_vm1, %v2140_v20  ;;  %v38_v41 = vadd.s32 2, %v2331_v12  ;;  %v49_v42 = vadd.s32 56, %v2331_v12  ;;  %v48_v49 = vadd.s32 48, %v2331_v12  ;;  %vm29_vm8 = vcmp.ge.s32.totalorder %v28_v35, 0 }
  0x23   :  { %469 = vmatmul.bf16.vlgmr.msra.gmra.mxu1 %v286_v6  ;;  %vm2397_vm7 = vcmp.eq.s32.totalorder %v127_v38, %v2334_v14  ;;  %v120_v46 = vand.u32 31, %v50_v39  ;;  %vm35_vm9 = vcmp.lt.s32.totalorder %v33_v36, 8  ;;  %v2141_v51 = vmov -1e+30  }
  0x24   :  { %483 = vmatmul.bf16.vlgmr.msra.gmra.mxu2 %v286_v6  ;;  %1642 = vmatpush.msk.msra.mxu3 %vm2356_vm2, %v2140_v20  ;;  %v113_v48 = vand.u32 31, %v49_v42  ;;  %v2411_v52 = vsel %vm24_vm6, 0.0, %v2141_v51  ;;  %vm40_vm11 = vcmp.lt.s32.totalorder %v38_v41, 8  ;;  %v106_v55 = vand.u32 31, %v48_v49 }
  0x25   :  { %453 = vmatpush.bf16.msra.mxu0 %v1559_v7  ;;  %vm2406_vm10 = vcmp.eq.s32.totalorder %v120_v46, %v2334_v14  ;;  %v2421_v60 = vsel %vm29_vm8, 0.0, %v2141_v51  ;;  %v2423_v61 = vsel %vm35_vm9, 0.0, %v2141_v51  ;;  %v47_v2 = vadd.s32 40, %v2331_v12 }
  0x26   :  { %1643 = vmatpush.msk.msra.mxu3 %vm2365_vm3, %v2140_v20  ;;  %vm2417_vm12 = vcmp.eq.s32.totalorder %v113_v48, %v2334_v14  ;;  %v2429_v3 = vsel %vm40_vm11, 0.0, %v2141_v51  ;;  %vm2432_vm13 = vcmp.eq.s32.totalorder %v106_v55, %v2334_v14  ;;  %v46_v26 = vadd.s32 32, %v2331_v12 }
  0x27   :  { %v99_v22 = vand.u32 31, %v47_v2  ;;  %v45_v28 = vadd.s32 24, %v2331_v12 }
  0x28   :  { %1644 = vmatpush.msk.msra.mxu3 %vm2375_vm4, %v2140_v20  ;;  %v92_v42 = vand.u32 31, %v46_v26  ;;  %v64_v26 = vand.u32 31, %v2331_v12 }
  0x29   :  { %454 = vmatpush.bf16.msra.mxu0 %v1547_v10  ;;  %vm2445_vm14 = vcmp.eq.s32.totalorder %v99_v22, %v2334_v14 }
  0x2a   :  { %1645 = vmatpush.msk.msra.mxu3 %vm2386_vm5, %v2140_v20  ;;  %vm2455_vm15 = vcmp.eq.s32.totalorder %v92_v42, %v2334_v14  ;;  %vm2489_vm11 = vcmp.eq.s32.totalorder %v64_v26, %v2334_v14 }
  0x2c   :  { %455 = vmatmul.bf16.vlgmr.msra.gmra.mxu0 %v286_v6  ;;  %1646 = vmatpush.msk.msra.mxu3 %vm2397_vm7, %v2140_v20  ;;  %v1989_v6 = vld [vmem:[%s2983_s1 + $0x16c] sm:$0xf] }
  0x2e   :  { %1647 = vmatpush.msk.msra.mxu3 %vm2406_vm10, %v2140_v20 }
  0x30   :  { %1648 = vmatpush.msk.msra.mxu3 %vm2417_vm12, %v2140_v20 }
  0x32   :  { %1649 = vmatpush.msk.msra.mxu3 %vm2432_vm13, %v2140_v20 }
  0x34   :  { %1650 = vmatpush.msk.msra.mxu3 %vm2445_vm14, %v2140_v20 }
  0x36   :  { %1651 = vmatpush.msk.msra.mxu3 %vm2455_vm15, %v2140_v20 }
  0xa0   :  { %v470_v34 = vpop.f32.mrf.mxu1 }
  0xa1   :  { %v489_v40 = vrot.slane %v470_v34, 6  ;;  %v499_v43 = vrot.slane %v470_v34, 7  ;;  %v521_v44 = vrot.slane %v470_v34, 1  ;;  %v533_v47 = vrot.slane %v470_v34, 2 }
  0xa7   :  { %v484_v53 = vpop.f32.mrf.mxu2 }
  0xa8   :  { %v491_v56 = vadd.f32 %v489_v40, %v484_v53  ;;  %v501_v57 = vadd.f32 %v499_v43, %v484_v53  ;;  %v511_v58 = vadd.f32 %v484_v53, %v470_v34  ;;  %v523_v59 = vadd.f32 %v521_v44, %v484_v53  ;;  %v472_v63 = vpop.f32.mrf.mxu1  ;;  %v1776_v34 = vld [vmem:[%s2983_s1 + $0x174] sm:$0xf0] }
  0xa9   :  { %v535_v62 = vadd.f32 %v533_v47, %v484_v53  ;;  %v490_v13 = vrot.slane %v472_v63, 6  ;;  %v500_v15 = vrot.slane %v472_v63, 7  ;;  %v522_v18 = vrot.slane %v472_v63, 1 }
  0xaa   :  { %v493_v4 = vmul.f32 0.2, %v491_v56  ;;  %v503_v5 = vmul.f32 0.2, %v501_v57  ;;  %v513_v7 = vmul.f32 0.2, %v511_v58 }
  0xab   :  { %v525_v8 = vmul.f32 0.2, %v523_v59  ;;  %v537_v9 = vmul.f32 0.2, %v535_v62  ;;  %v534_v19 = vrot.slane %v472_v63, 2  ;;  %v85_v43 = vand.u32 31, %v45_v28 }
  0xac   :  { %v495_v10 = vmax.f32 %v491_v56, %v493_v4  ;;  %v505_v11 = vmax.f32 %v501_v57, %v503_v5  ;;  %v515_v29 = vmax.f32 %v511_v58, %v513_v7  ;;  %v44_v53 = vadd.s32 16, %v2331_v12  ;;  %v1991_v5 = vld [vmem:[%s2983_s1 + $0x178] sm:$0xf0] }
  0xad   :  { %v527_v16 = vmax.f32 %v523_v59, %v525_v8  ;;  %v539_v32 = vmax.f32 %v535_v62, %v537_v9  ;;  %vm2465_vm6 = vcmp.eq.s32.totalorder %v85_v43, %v2334_v14  ;;  %v1782_v62 = vld [vmem:[%s2983_s1 + $0x170] sm:$0xf] }
  0xae   :  { %v497_v23 = vadd.f32 %v495_v10, %v2411_v52  ;;  %v507_v25 = vadd.f32 %v505_v11, %v2421_v60  ;;  %v78_v9 = vand.u32 31, %v44_v53  ;;  %v43_v10 = vadd.s32 8, %v2331_v12  ;;  %1652 = vmatpush.msk.msra.mxu3 %vm2465_vm6, %v2140_v20 }
  0xaf   :  { %v529_v30 = vadd.f32 %v527_v16, %v2423_v61  ;;  %v486_v33 = vpop.f32.mrf.mxu2  ;;  %v541_v56 = vadd.f32 %v539_v32, %v2429_v3 }
  0xb0   :  { %v509_v35 = vmax.f32 %v497_v23, %v507_v25  ;;  %v492_v36 = vadd.f32 %v490_v13, %v486_v33  ;;  %v502_v38 = vadd.f32 %v500_v15, %v486_v33  ;;  %v512_v39 = vadd.f32 %v486_v33, %v472_v63 }
  0xb1   :  { %v524_v40 = vadd.f32 %v522_v18, %v486_v33  ;;  %v536_v41 = vadd.f32 %v534_v19, %v486_v33  ;;  %vm2474_vm8 = vcmp.eq.s32.totalorder %v78_v9, %v2334_v14  ;;  %v71_v22 = vand.u32 31, %v43_v10 }
  0xb2   :  { %v519_v44 = vmax.f32 %v509_v35, %v515_v29  ;;  %v494_v46 = vmul.f32 0.2, %v492_v36  ;;  %v504_v47 = vmul.f32 0.2, %v502_v38  ;;  %v514_v48 = vmul.f32 0.2, %v512_v39  ;;  %1653 = vmatpush.msk.msra.mxu3 %vm2474_vm8, %v2140_v20 }
  0xb3   :  { %v526_v49 = vmul.f32 0.2, %v524_v40  ;;  %v538_v51 = vmul.f32 0.2, %v536_v41  ;;  %vm2484_vm9 = vcmp.eq.s32.totalorder %v71_v22, %v2334_v14  ;;  %v1779_v19 = vor.u32 %v1989_v6, %v1776_v34  ;;  %v1762_v35 = vld [vmem:[%s2983_s1 + $0x150] sm:$0xf] }
  0xb4   :  { %v531_v55 = vmax.f32 %v519_v44, %v529_v30  ;;  %v496_v57 = vmax.f32 %v492_v36, %v494_v46  ;;  %v506_v58 = vmax.f32 %v502_v38, %v504_v47  ;;  %v516_v59 = vmax.f32 %v512_v39, %v514_v48  ;;  %1654 = vmatpush.msk.msra.mxu3 %vm2484_vm9, %v2140_v20  ;;  %v456_v38 = vpop.f32.mrf.mxu0  ;;  %v1972_v6 = vld [vmem:[%s2983_s1 + $0xe0] sm:$0xf0]  ;;  %v1704_v34 = vld [vmem:[%s2983_s1 + $0xe4] sm:$0xf0] }
  0xb5   :  { %v528_v7 = vmax.f32 %v524_v40, %v526_v49  ;;  %v540_v8 = vmax.f32 %v536_v41, %v538_v51  ;;  %v553_v41 = vrot.slane %v456_v38, 6  ;;  %v567_v42 = vrot.slane %v456_v38, 7  ;;  %874 = vmatpush.bf16.msrb.mxu1 %v1779_v19 }
  0xb6   :  { %v543_v63 = vmax.f32 %v531_v55, %v541_v56  ;;  %v498_v2 = vadd.f32 %v496_v57, %v2411_v52  ;;  %v508_v4 = vadd.f32 %v506_v58, %v2421_v60  ;;  %1655 = vmatpush.msk.msra.mxu3 %vm2489_vm11, %v2140_v20  ;;  %v593_v10 = vrot.slane %v456_v38, 1 }
  0xb7   :  { %v542_v36 = vadd.f32 %v540_v8, %v2429_v3 }
  0xb8   :  { %v545_v11 = vsub.f32 %v497_v23, %v543_v63  ;;  %v559_v13 = vsub.f32 %v507_v25, %v543_v63  ;;  %v573_v15 = vsub.f32 %v515_v29, %v543_v63  ;;  %v585_v16 = vsub.f32 %v529_v30, %v543_v63  ;;  %1784 = vmatpush.msk.msrb.mxu3 %vm2338_vm0, %v2140_v20 }
  0xb9   :  { %v510_v18 = vmax.f32 %v498_v2, %v508_v4  ;;  %v599_v23 = vsub.f32 %v541_v56, %v543_v63  ;;  %v530_v29 = vadd.f32 %v528_v7, %v2423_v61  ;;  %v1783_v30 = vor.u32 %v1991_v5, %v1782_v62 }
  0xba   :  { %v547_v28 = vmul.f32 1.442695, %v545_v11  ;;  %v561_v32 = vmul.f32 1.442695, %v559_v13  ;;  %v575_v33 = vmul.f32 1.442695, %v573_v15  ;;  %1785 = vmatpush.msk.msrb.mxu3 %vm2347_vm1, %v2140_v20 }
  0xbb   :  { %v520_v25 = vmax.f32 %v510_v18, %v516_v59  ;;  %v587_v39 = vmul.f32 1.442695, %v585_v16  ;;  %v601_v14 = vmul.f32 1.442695, %v599_v23  ;;  %v607_v23 = vrot.slane %v456_v38, 2  ;;  %888 = vmatpush.bf16.msrb.mxu2 %v1783_v30 }
  0xbc   :  { %2030 = vpow2.f32 %v547_v28  ;;  %1786 = vmatpush.msk.msrb.mxu3 %vm2356_vm2, %v2140_v20  ;;  %v458_v11 = vpop.f32.mrf.mxu0  ;;  %v1710_v30 = vld [vmem:[%s2983_s1 + $0xe0] sm:$0xf] }
  0xbd   :  { %2032 = vpow2.f32 %v561_v32  ;;  %v532_v12 = vmax.f32 %v520_v25, %v530_v29  ;;  %v554_v22 = vrot.slane %v458_v11, 6  ;;  %v568_v32 = vrot.slane %v458_v11, 7 }
  0xbe   :  { %2034 = vpow2.f32 %v575_v33  ;;  %1787 = vmatpush.msk.msrb.mxu3 %vm2365_vm3, %v2140_v20 }
  0xbf   :  { %v544_v40 = vmax.f32 %v532_v12, %v542_v36  ;;  %2036 = vpow2.f32 %v587_v39 }
  0xc0   :  { %2038 = vpow2.f32 %v601_v14  ;;  %1788 = vmatpush.msk.msrb.mxu3 %vm2375_vm4, %v2140_v20 }
  0xc1   :  { %v546_v43 = vsub.f32 %v498_v2, %v544_v40  ;;  %v560_v44 = vsub.f32 %v508_v4, %v544_v40  ;;  %v574_v46 = vsub.f32 %v516_v59, %v544_v40  ;;  %v586_v48 = vsub.f32 %v530_v29, %v544_v40 }
  0xc2   :  { %v2031_v47 = vpop.eup %2030  ;;  %v600_v49 = vsub.f32 %v542_v36, %v544_v40  ;;  %1789 = vmatpush.msk.msrb.mxu3 %vm2386_vm5, %v2140_v20 }
  0xc3   :  { %v2033_v51 = vpop.eup %2032  ;;  %v549_v53 = vmul.f32 1.442695, %v546_v43  ;;  %v563_v55 = vmul.f32 1.442695, %v560_v44  ;;  %v577_v56 = vmul.f32 1.442695, %v574_v46  ;;  %v555_v57 = vmul.f32 %v2031_v47, %v553_v41 }
  0xc4   :  { %v2035_v58 = vpop.eup %2034  ;;  %v569_v59 = vmul.f32 %v2033_v51, %v567_v42  ;;  %v565_v63 = vadd.f32 %v2033_v51, %v2031_v47  ;;  %v589_v7 = vmul.f32 1.442695, %v586_v48  ;;  %v603_v13 = vmul.f32 1.442695, %v600_v49  ;;  %1790 = vmatpush.msk.msrb.mxu3 %vm2397_vm7, %v2140_v20 }
  0xc5   :  { %2040 = vpow2.f32 %v549_v53  ;;  %v2037_v8 = vpop.eup %2036  ;;  %v581_v9 = vmul.f32 %v2035_v58, %v456_v38  ;;  %v594_v49 = vrot.slane %v458_v11, 1 }
  0xc6   :  { %2042 = vpow2.f32 %v563_v55  ;;  %v571_v2 = vadd.f32 %v569_v59, %v555_v57  ;;  %v579_v4 = vadd.f32 %v2035_v58, %v565_v63  ;;  %v2039_v15 = vpop.eup %2038  ;;  %v595_v33 = vmul.f32 %v2037_v8, %v593_v10  ;;  %1791 = vmatpush.msk.msrb.mxu3 %vm2406_vm10, %v2140_v20  ;;  %v1764_v10 = vld [vmem:[%s2983_s1 + $0x15c] sm:$0xf0] }
  0xc7   :  { %2044 = vpow2.f32 %v577_v56  ;;  %v609_v40 = vmul.f32 %v2039_v15, %v607_v23  ;;  %v608_v58 = vrot.slane %v458_v11, 2  ;;  %v1985_v23 = vld [vmem:[%s2983_s1 + $0x148] sm:$0xf0] }
  0xc8   :  { %v591_v16 = vadd.f32 %v2037_v8, %v579_v4  ;;  %v583_v18 = vadd.f32 %v581_v9, %v571_v2  ;;  %2046 = vpow2.f32 %v589_v7  ;;  %1792 = vmatpush.msk.msrb.mxu3 %vm2417_vm12, %v2140_v20  ;;  %v1987_v7 = vld [vmem:[%s2983_s1 + $0x158] sm:$0xf0]  ;;  %v1986_v8 = vld [vmem:[%s2983_s1 + $0x154] sm:$0xf] }
  0xc9   :  { %2048 = vpow2.f32 %v603_v13  ;;  %v1763_v9 = vor.u32 %v1987_v7, %v1762_v35  ;;  %v1988_v13 = vld [vmem:[%s2983_s1 + $0x160] sm:$0xf0]  ;;  %v1973_v35 = vld [vmem:[%s2983_s1 + $0xe8] sm:$0xf0]  ;;  %v1690_v7 = vld [vmem:[%s2983_s1 + $0xc0] sm:$0xf] }
  0xca   :  { %v605_v26 = vadd.f32 %v2039_v15, %v591_v16  ;;  %v597_v39 = vadd.f32 %v595_v33, %v583_v18  ;;  %1793 = vmatpush.msk.msrb.mxu3 %vm2432_vm13, %v2140_v20  ;;  %v1767_v15 = vor.u32 %v1986_v8, %v1764_v10  ;;  %v1750_v18 = vld [vmem:[%s2983_s1 + $0x138] sm:$0xf]  ;;  %v1758_v33 = vld [vmem:[%s2983_s1 + $0x140] sm:$0xf]  ;;  %v1711_v8 = vor.u32 %v1973_v35, %v1710_v30  ;;  %v1968_v10 = vld [vmem:[%s2983_s1 + $0xc4] sm:$0xf] }
  0xcb   :  { %v2041_v28 = vpop.eup %2040 }
  0xcc   :  { %v2043_v25 = vpop.eup %2042  ;;  %v556_v29 = vmul.f32 %v2041_v28, %v554_v22  ;;  %2050 = vrcp.f32 %v605_v26  ;;  %v611_v46 = vadd.f32 %v609_v40, %v597_v39  ;;  %1794 = vmatpush.msk.msrb.mxu3 %vm2445_vm14, %v2140_v20  ;;  %875 = vmatpush.bf16.msrb.mxu1 %v1767_v15  ;;  %v1984_v22 = vld [vmem:[%s2983_s1 + $0x140] sm:$0xf0]  ;;  %v1983_v26 = vld [vmem:[%s2983_s1 + $0x13c] sm:$0xf]  ;;  %v1740_v40 = vld [vmem:[%s2983_s1 + $0x12c] sm:$0xf0] }
  0xcd   :  { %v2045_v12 = vpop.eup %2044  ;;  %v570_v36 = vmul.f32 %v2043_v25, %v568_v32  ;;  %v566_v14 = vadd.f32 %v2043_v25, %v2041_v28  ;;  %v1751_v28 = vor.u32 %v1984_v22, %v1750_v18  ;;  %v1752_v32 = vld [vmem:[%s2983_s1 + $0x144] sm:$0xf0]  ;;  %v1980_v39 = vld [vmem:[%s2983_s1 + $0x124] sm:$0xf] }
  0xce   :  { %v2047_v38 = vpop.eup %2046  ;;  %v582_v43 = vmul.f32 %v2045_v12, %v458_v11  ;;  %1795 = vmatpush.msk.msrb.mxu3 %vm2455_vm15, %v2140_v20  ;;  %v1770_v11 = vld [vmem:[%s2983_s1 + $0x158] sm:$0xf]  ;;  %v1755_v25 = vor.u32 %v1983_v26, %v1752_v32  ;;  %v1698_v15 = vld [vmem:[%s2983_s1 + $0xc8] sm:$0xf] }
  0xcf   :  { %v572_v41 = vadd.f32 %v570_v36, %v556_v29  ;;  %v580_v42 = vadd.f32 %v2045_v12, %v566_v14  ;;  %v2049_v44 = vpop.eup %2048  ;;  %v596_v56 = vmul.f32 %v2047_v38, %v594_v49  ;;  %v1771_v16 = vor.u32 %v1988_v13, %v1770_v11  ;;  %v1738_v12 = vld [vmem:[%s2983_s1 + $0x120] sm:$0xf]  ;;  %v1981_v36 = vld [vmem:[%s2983_s1 + $0x128] sm:$0xf0]  ;;  %v1728_v49 = vld [vmem:[%s2983_s1 + $0x114] sm:$0xf0] }
  0xd0   :  { %v610_v59 = vmul.f32 %v2049_v44, %v608_v58  ;;  %1796 = vmatpush.msk.msrb.mxu3 %vm2465_vm6, %v2140_v20  ;;  %v1759_v29 = vor.u32 %v1985_v23, %v1758_v33  ;;  %876 = vmatpush.bf16.msrb.mxu1 %v1755_v25  ;;  %v1739_v14 = vor.u32 %v1981_v36, %v1738_v12  ;;  %v1692_v11 = vld [vmem:[%s2983_s1 + $0xcc] sm:$0xf0] }
  0xd1   :  { %v592_v47 = vadd.f32 %v2047_v38, %v580_v42  ;;  %v584_v51 = vadd.f32 %v582_v43, %v572_v41  ;;  %889 = vmatpush.bf16.msrb.mxu2 %v1771_v16  ;;  %v1746_v41 = vld [vmem:[%s2983_s1 + $0x128] sm:$0xf]  ;;  %v1982_v42 = vld [vmem:[%s2983_s1 + $0x130] sm:$0xf0]  ;;  %v1743_v38 = vor.u32 %v1980_v39, %v1740_v40  ;;  %v1695_v26 = vor.u32 %v1968_v10, %v1692_v11 }
  0xd2   :  { %v2051_v48 = vpop.eup %2050  ;;  %1797 = vmatpush.msk.msrb.mxu3 %vm2474_vm8, %v2140_v20  ;;  %v1747_v43 = vor.u32 %v1982_v42, %v1746_v41  ;;  %v1970_v16 = vld [vmem:[%s2983_s1 + $0xd0] sm:$0xf0] }
  0xd3   :  { %v615_v53 = vmul.f32 %v2051_v48, %v611_v46  ;;  %v606_v55 = vadd.f32 %v2049_v44, %v592_v47  ;;  %v598_v57 = vadd.f32 %v596_v56, %v584_v51  ;;  %v1726_v44 = vld [vmem:[%s2983_s1 + $0x108] sm:$0xf]  ;;  %v1978_v46 = vld [vmem:[%s2983_s1 + $0x110] sm:$0xf0]  ;;  %v1977_v47 = vld [vmem:[%s2983_s1 + $0x10c] sm:$0xf]  ;;  %v1699_v32 = vor.u32 %v1970_v16, %v1698_v15 }
  0xd4   :  { %1798 = vmatpush.msk.msrb.mxu3 %vm2484_vm9, %v2140_v20  ;;  %877 = vmatpush.bf16.msrb.mxu1 %v1743_v38  ;;  %v1727_v48 = vor.u32 %v1978_v46, %v1726_v44  ;;  %v1734_v51 = vld [vmem:[%s2983_s1 + $0x110] sm:$0xf] }
  0xd5   :  { %633 = vmatmul.f32.vlgmr.msra.gmra.mxu3 %v615_v53  ;;  %2052 = vrcp.f32 %v606_v55  ;;  %v612_v63 = vadd.f32 %v610_v59, %v598_v57  ;;  %890 = vmatpush.bf16.msrb.mxu2 %v1759_v29  ;;  %v1979_v53 = vld [vmem:[%s2983_s1 + $0x118] sm:$0xf0]  ;;  %v1731_v55 = vor.u32 %v1977_v47, %v1728_v49  ;;  %v1714_v59 = vld [vmem:[%s2983_s1 + $0xf0] sm:$0xf] }
  0xd6   :  { %1799 = vmatpush.msk.msrb.mxu3 %vm2489_vm11, %v2140_v20  ;;  %v1735_v56 = vor.u32 %v1979_v53, %v1734_v51  ;;  %v2022_v53 = vld [vmem:[%s2985_s3] ss:$0 sm:$0xff] }
  0xd8   :  { %1928 = vmatpush.msk.msra.mxu3 %vm2338_vm0, %v2140_v20  ;;  %878 = vmatpush.bf16.msrb.mxu1 %v1731_v55 }
  0xd9   :  { %891 = vmatpush.bf16.msrb.mxu2 %v1747_v43 }
  0xda   :  { %1929 = vmatpush.msk.msra.mxu3 %vm2347_vm1, %v2140_v20 }
  0xdb   :  { %v2053_v2 = vpop.eup %2052 }
  0xdc   :  { %v616_v4 = vmul.f32 %v2053_v2, %v612_v63  ;;  %1930 = vmatpush.msk.msra.mxu3 %vm2356_vm2, %v2140_v20  ;;  %v1975_v63 = vld [vmem:[%s2983_s1 + $0xf8] sm:$0xf0] }
  0xdd   :  { %892 = vmatpush.bf16.msrb.mxu2 %v1735_v56 }
  0xde   :  { %636 = vmatmul.f32.gmra.mxu3 %v616_v4  ;;  %v1715_v4 = vor.u32 %v1975_v63, %v1714_v59 }
  0xdf   :  { %1931 = vmatpush.msk.msra.mxu3 %vm2365_vm3, %v2140_v20 }
  0xe1   :  { %1932 = vmatpush.msk.msra.mxu3 %vm2375_vm4, %v2140_v20 }
  0xe3   :  { %1933 = vmatpush.msk.msra.mxu3 %vm2386_vm5, %v2140_v20 }
  0xe5   :  { %1934 = vmatpush.msk.msra.mxu3 %vm2397_vm7, %v2140_v20 }
  0xe7   :  { %1935 = vmatpush.msk.msra.mxu3 %vm2406_vm10, %v2140_v20 }
  0xe9   :  { %1936 = vmatpush.msk.msra.mxu3 %vm2417_vm12, %v2140_v20 }
  0xeb   :  { %1937 = vmatpush.msk.msra.mxu3 %vm2432_vm13, %v2140_v20 }
  0xed   :  { %1938 = vmatpush.msk.msra.mxu3 %vm2445_vm14, %v2140_v20 }
  0xef   :  { %1939 = vmatpush.msk.msra.mxu3 %vm2455_vm15, %v2140_v20 }
  0xf1   :  { %1940 = vmatpush.msk.msra.mxu3 %vm2465_vm6, %v2140_v20 }
  0xf3   :  { %1941 = vmatpush.msk.msra.mxu3 %vm2474_vm8, %v2140_v20 }
  0xf5   :  { %1942 = vmatpush.msk.msra.mxu3 %vm2484_vm9, %v2140_v20 }
  0xf7   :  { %1943 = vmatpush.msk.msra.mxu3 %vm2489_vm11, %v2140_v20 }
 0x158   :  { %v634_v21 = vpop.f32.mrf.mxu3 }
 0x159   :  { %v642_v24 = vadd.f32 %v2021_v17, %v634_v21  ;;  %v1716_v21 = vld [vmem:[%s2983_s1 + $0xfc] sm:$0xf0] }
 0x15b   :  { %v2600_v27 = vadd.f32 %v642_v24, %v2310_v0  ;;  %v1774_v0 = vld [vmem:[%s2983_s1 + $0x168] sm:$0xf]  ;;  %v1722_v24 = vld [vmem:[%s2983_s1 + $0xf8] sm:$0xf] }
 0x15d   :  { %646 = vadd.xlane.f32.xlu0 %v2600_v27  ;;  %v652_v31 = vmul.f32 %v2600_v27, %v2600_v27 }
 0x15f   :  { %654 = vadd.xlane.f32.xlu1 %v652_v31 }
 0x161   :  { %v637_v37 = vpop.f32.mrf.mxu3 }
 0x162   :  { %v643_v45 = vadd.f32 %v2021_v17, %v637_v37  ;;  %v1974_v17 = vld [vmem:[%s2983_s1 + $0xf4] sm:$0xf] }
 0x164   :  { %v2606_v50 = vadd.f32 %v643_v45, %v2315_v1  ;;  %v1775_v1 = vor.u32 %v1990_v54, %v1774_v0  ;;  %v1719_v45 = vor.u32 %v1974_v17, %v1716_v21  ;;  %v1702_v0 = vld [vmem:[%s2983_s1 + $0xd8] sm:$0xf] }
 0x165   :  { %v1703_v5 = vor.u32 %v1972_v6, %v1702_v0 }
 0x166   :  { %648 = vadd.xlane.f32.xlu0 %v2606_v50  ;;  %v653_v20 = vmul.f32 %v2606_v50, %v2606_v50  ;;  %860 = vmatpush.bf16.msrb.mxu0 %v1775_v1  ;;  %v1971_v1 = vld [vmem:[%s2983_s1 + $0xdc] sm:$0xf] }
 0x167   :  { %879 = vmatpush.bf16.msrb.mxu1 %v1719_v45  ;;  %v1707_v19 = vor.u32 %v1971_v1, %v1704_v34 }
 0x168   :  { %656 = vadd.xlane.f32.xlu1 %v653_v20  ;;  %v1976_v20 = vld [vmem:[%s2983_s1 + $0x100] sm:$0xf0] }
 0x169   :  { %v1723_v54 = vor.u32 %v1976_v20, %v1722_v24 }
 0x16a   :  { %861 = vmatpush.bf16.msrb.mxu0 %v1763_v9  ;;  %v1969_v9 = vld [vmem:[%s2983_s1 + $0xc8] sm:$0xf0] }
 0x16b   :  { %893 = vmatpush.bf16.msrb.mxu2 %v1723_v54  ;;  %v1691_v18 = vor.u32 %v1969_v9, %v1690_v7  ;;  %880 = vmatpush.bf16.msrb.mxu1 %v1707_v19 }
 0x16e   :  { %862 = vmatpush.bf16.msrb.mxu0 %v1751_v28 }
 0x16f   :  { %894 = vmatpush.bf16.msrb.mxu2 %v1711_v8  ;;  %881 = vmatpush.bf16.msrb.mxu1 %v1695_v26 }
 0x172   :  { %863 = vmatpush.bf16.msrb.mxu0 %v1739_v14 }
 0x173   :  { %895 = vmatpush.bf16.msrb.mxu2 %v1699_v32 }
 0x176   :  { %864 = vmatpush.bf16.msrb.mxu0 %v1727_v48 }
 0x17a   :  { %865 = vmatpush.bf16.msrb.mxu0 %v1715_v4 }
 0x17e   :  { %866 = vmatpush.bf16.msrb.mxu0 %v1703_v5 }
 0x182   :  { %867 = vmatpush.bf16.msrb.mxu0 %v1691_v18 }
 0x1d0   :  { %v647_v57 = vpop.xlane.xlu0 %646 }
 0x1d1   :  { %v2701_v58 = vmul.f32 0.03125, %v647_v57 }
 0x1d2   :  { %v655_v2 = vpop.xlane.xlu1 %654 }
 0x1d3   :  { %v660_v31 = vmul.f32 %v2701_v58, %v2701_v58  ;;  %v658_v37 = vmul.f32 0.03125, %v655_v2  ;;  %v664_v48 = vsub.f32 %v2600_v27, %v2701_v58  ;;  %v2023_v2 = vld [vmem:[%s2986_s4] ss:$0 sm:$0xff] }
 0x1d5   :  { %v662_v62 = vsub.f32 %v658_v37, %v660_v31 }
 0x1d7   :  { %v666_v13 = vadd.f32 1e-05, %v662_v62 }
 0x1d9   :  { %2054 = vrsqrt.f32 %v666_v13  ;;  %v649_v22 = vpop.xlane.xlu0 %648  ;;  %vm674_vm1 = vweird.f32 %v666_v13 }
 0x1da   :  { %v651_v28 = vmul.f32 0.03125, %v649_v22 }
 0x1db   :  { %v657_v33 = vpop.xlane.xlu1 %656 }
 0x1dc   :  { %v661_v23 = vmul.f32 %v651_v28, %v651_v28  ;;  %v659_v25 = vmul.f32 0.03125, %v657_v33  ;;  %v665_v56 = vsub.f32 %v2606_v50, %v651_v28 }
 0x1de   :  { %v663_v29 = vsub.f32 %v659_v25, %v661_v23 }
 0x1df   :  { %v2055_v12 = vpop.eup %2054 }
 0x1e0   :  { %v669_v36 = vmul.f32 %v2055_v12, %v666_v13  ;;  %v667_v39 = vadd.f32 1e-05, %v663_v29  ;;  %vm675_vm0 = vweird.f32 %v2055_v12 }
 0x1e1   :  { %vm676_vm2 = vmor %vm674_vm1, %vm675_vm0 }
 0x1e2   :  { %v670_v14 = vmul.f32 %v2055_v12, %v669_v36  ;;  %2056 = vrsqrt.f32 %v667_v39  ;;  %vm684_vm4 = vweird.f32 %v667_v39 }
 0x1e4   :  { %v671_v40 = vmul.f32 0.5, %v670_v14 }
 0x1e6   :  { %v672_v41 = vsub.f32 1.5, %v671_v40 }
 0x1e8   :  { %v2057_v42 = vpop.eup %2056  ;;  %v673_v38 = vmul.f32 %v2055_v12, %v672_v41 }
 0x1e9   :  { %v679_v43 = vmul.f32 %v2057_v42, %v667_v39  ;;  %vm685_vm3 = vweird.f32 %v2057_v42 }
 0x1ea   :  { %v677_v46 = vsel %vm676_vm2, %v2055_v12, %v673_v38  ;;  %vm686_vm5 = vmor %vm684_vm4, %vm685_vm3 }
 0x1eb   :  { %v680_v44 = vmul.f32 %v2057_v42, %v679_v43  ;;  %v688_v51 = vmul.f32 %v677_v46, %v664_v48 }
 0x1ed   :  { %v681_v47 = vmul.f32 0.5, %v680_v44  ;;  %v692_v63 = vmul.f32 %v2022_v53, %v688_v51 }
 0x1ef   :  { %v682_v49 = vsub.f32 1.5, %v681_v47  ;;  %v2768_v58 = vadd.f32 %v2023_v2, %v692_v63 }
 0x1f1   :  { %v683_v55 = vmul.f32 %v2057_v42, %v682_v49 }
 0x1f3   :  { %v687_v57 = vsel %vm686_vm5, %v2057_v42, %v683_v55 }
 0x1f4   :  { %v689_v59 = vmul.f32 %v687_v57, %v665_v56 }
 0x1f6   :  { %v693_v27 = vmul.f32 %v2022_v53, %v689_v59 }
 0x1f8   :  { %v2770_v4 = vadd.f32 %v2023_v2, %v693_v27 }
 0x1fa   :  { %v698_v17 = vpack.c.bf16 %v2770_v4, %v2768_v58 }
 0x1fc   :  { %868 = vmatmul.bf16.vlgmr.msrb.gmra.mxu0 %v698_v17  ;;  %882 = vmatmul.bf16.vlgmr.msrb.gmra.mxu1 %v698_v17 }
 0x1fd   :  { %896 = vmatmul.bf16.vlgmr.msrb.gmra.mxu2 %v698_v17 }
 0x279   :  { %v883_v50 = vpop.f32.mrf.mxu1 }
 0x27a   :  { %v902_v21 = vrot.slane %v883_v50, 6  ;;  %v912_v24 = vrot.slane %v883_v50, 7  ;;  %v934_v31 = vrot.slane %v883_v50, 1  ;;  %v946_v37 = vrot.slane %v883_v50, 2 }
 0x280   :  { %v897_v45 = vpop.f32.mrf.mxu2 }
 0x281   :  { %v904_v20 = vadd.f32 %v902_v21, %v897_v45  ;;  %v914_v0 = vadd.f32 %v912_v24, %v897_v45  ;;  %v924_v54 = vadd.f32 %v897_v45, %v883_v50  ;;  %v936_v6 = vadd.f32 %v934_v31, %v897_v45  ;;  %v885_v5 = vpop.f32.mrf.mxu1 }
 0x282   :  { %v948_v1 = vadd.f32 %v946_v37, %v897_v45  ;;  %v903_v9 = vrot.slane %v885_v5, 6  ;;  %v913_v15 = vrot.slane %v885_v5, 7  ;;  %v935_v18 = vrot.slane %v885_v5, 1  ;;  %v869_v45 = vpop.f32.mrf.mxu0 }
 0x283   :  { %v906_v34 = vmul.f32 0.2, %v904_v20  ;;  %v916_v62 = vmul.f32 0.2, %v914_v0  ;;  %v926_v19 = vmul.f32 0.2, %v924_v54 }
 0x284   :  { %v938_v30 = vmul.f32 0.2, %v936_v6  ;;  %v950_v8 = vmul.f32 0.2, %v948_v1  ;;  %v947_v22 = vrot.slane %v885_v5, 2 }
 0x285   :  { %v908_v35 = vmax.f32 %v904_v20, %v906_v34  ;;  %v918_v7 = vmax.f32 %v914_v0, %v916_v62  ;;  %v928_v16 = vmax.f32 %v924_v54, %v926_v19  ;;  %v966_v34 = vrot.slane %v869_v45, 6 }
 0x286   :  { %v940_v13 = vmax.f32 %v936_v6, %v938_v30  ;;  %v952_v32 = vmax.f32 %v948_v1, %v950_v8 }
 0x287   :  { %v910_v10 = vadd.f32 %v908_v35, %v2411_v52  ;;  %v920_v11 = vadd.f32 %v918_v7, %v2421_v60  ;;  %v980_v35 = vrot.slane %v869_v45, 7 }
 0x288   :  { %v899_v26 = vpop.f32.mrf.mxu2  ;;  %v942_v39 = vadd.f32 %v940_v13, %v2423_v61  ;;  %v954_v38 = vadd.f32 %v952_v32, %v2429_v3 }
 0x289   :  { %v922_v28 = vmax.f32 %v910_v10, %v920_v11  ;;  %v905_v33 = vadd.f32 %v903_v9, %v899_v26  ;;  %v915_v23 = vadd.f32 %v913_v15, %v899_v26  ;;  %v925_v25 = vadd.f32 %v899_v26, %v885_v5 }
 0x28a   :  { %v937_v29 = vadd.f32 %v935_v18, %v899_v26  ;;  %v949_v12 = vadd.f32 %v947_v22, %v899_v26 }
 0x28b   :  { %v932_v36 = vmax.f32 %v922_v28, %v928_v16  ;;  %v907_v14 = vmul.f32 0.2, %v905_v33  ;;  %v917_v40 = vmul.f32 0.2, %v915_v23  ;;  %v927_v46 = vmul.f32 0.2, %v925_v25 }
 0x28c   :  { %v939_v41 = vmul.f32 0.2, %v937_v29  ;;  %v951_v47 = vmul.f32 0.2, %v949_v12 }
 0x28d   :  { %v944_v42 = vmax.f32 %v932_v36, %v942_v39  ;;  %v909_v43 = vmax.f32 %v905_v33, %v907_v14  ;;  %v919_v44 = vmax.f32 %v915_v23, %v917_v40  ;;  %v929_v2 = vmax.f32 %v925_v25, %v927_v46  ;;  %v871_v23 = vpop.f32.mrf.mxu0 }
 0x28e   :  { %v941_v53 = vmax.f32 %v937_v29, %v939_v41  ;;  %v953_v27 = vmax.f32 %v949_v12, %v951_v47  ;;  %v967_v40 = vrot.slane %v871_v23, 6 }
 0x28f   :  { %v956_v48 = vmax.f32 %v944_v42, %v954_v38  ;;  %v911_v49 = vadd.f32 %v909_v43, %v2411_v52  ;;  %v921_v51 = vadd.f32 %v919_v44, %v2421_v60 }
 0x290   :  { %v943_v37 = vadd.f32 %v941_v53, %v2423_v61  ;;  %v955_v54 = vadd.f32 %v953_v27, %v2429_v3 }
 0x291   :  { %v958_v55 = vsub.f32 %v910_v10, %v956_v48  ;;  %v972_v56 = vsub.f32 %v920_v11, %v956_v48  ;;  %v986_v57 = vsub.f32 %v928_v16, %v956_v48  ;;  %v998_v59 = vsub.f32 %v942_v39, %v956_v48 }
 0x292   :  { %v923_v63 = vmax.f32 %v911_v49, %v921_v51  ;;  %v1012_v24 = vsub.f32 %v954_v38, %v956_v48  ;;  %v1006_v39 = vrot.slane %v869_v45, 1  ;;  %v981_v38 = vrot.slane %v871_v23, 7 }
 0x293   :  { %v960_v17 = vmul.f32 1.442695, %v958_v55  ;;  %v974_v50 = vmul.f32 1.442695, %v972_v56  ;;  %v988_v21 = vmul.f32 1.442695, %v986_v57 }
 0x294   :  { %v933_v31 = vmax.f32 %v923_v63, %v929_v2  ;;  %v1000_v20 = vmul.f32 1.442695, %v998_v59  ;;  %v1014_v6 = vmul.f32 1.442695, %v1012_v24  ;;  %v1020_v48 = vrot.slane %v869_v45, 2 }
 0x295   :  { %2058 = vpow2.f32 %v960_v17 }
 0x296   :  { %2060 = vpow2.f32 %v974_v50  ;;  %v945_v0 = vmax.f32 %v933_v31, %v943_v37 }
 0x297   :  { %2062 = vpow2.f32 %v988_v21  ;;  %v1007_v21 = vrot.slane %v871_v23, 1 }
 0x298   :  { %v957_v1 = vmax.f32 %v945_v0, %v955_v54  ;;  %2064 = vpow2.f32 %v1000_v20  ;;  %v1021_v0 = vrot.slane %v871_v23, 2 }
 0x299   :  { %2066 = vpow2.f32 %v1014_v6 }
 0x29a   :  { %v959_v62 = vsub.f32 %v911_v49, %v957_v1  ;;  %v973_v5 = vsub.f32 %v921_v51, %v957_v1  ;;  %v987_v19 = vsub.f32 %v929_v2, %v957_v1  ;;  %v999_v7 = vsub.f32 %v943_v37, %v957_v1 }
 0x29b   :  { %v2059_v30 = vpop.eup %2058  ;;  %v1013_v8 = vsub.f32 %v955_v54, %v957_v1 }
 0x29c   :  { %v2061_v9 = vpop.eup %2060  ;;  %v962_v10 = vmul.f32 1.442695, %v959_v62  ;;  %v976_v11 = vmul.f32 1.442695, %v973_v5  ;;  %v990_v13 = vmul.f32 1.442695, %v987_v19  ;;  %v968_v15 = vmul.f32 %v2059_v30, %v966_v34 }
 0x29d   :  { %v2063_v16 = vpop.eup %2062  ;;  %v978_v18 = vadd.f32 %v2061_v9, %v2059_v30  ;;  %v982_v22 = vmul.f32 %v2061_v9, %v980_v35  ;;  %v1002_v32 = vmul.f32 1.442695, %v999_v7  ;;  %v1016_v29 = vmul.f32 1.442695, %v1013_v8  ;;  %v2024_v62 = vld [vmem:[%s2984_s2 + $0x1] ss:$0 sm:$0xff] }
 0x29e   :  { %2068 = vpow2.f32 %v962_v10  ;;  %v2065_v33 = vpop.eup %2064  ;;  %v994_v25 = vmul.f32 %v2063_v16, %v869_v45 }
 0x29f   :  { %2070 = vpow2.f32 %v976_v11  ;;  %v984_v26 = vadd.f32 %v982_v22, %v968_v15  ;;  %v992_v28 = vadd.f32 %v2063_v16, %v978_v18  ;;  %v2067_v12 = vpop.eup %2066  ;;  %v1008_v43 = vmul.f32 %v2065_v33, %v1006_v39  ;;  %v2014_v11 = vld [vmem:[%s2983_s1 + $0x230] sm:$0xf0]  ;;  %v1920_v15 = vld [vmem:[%s2983_s1 + $0x234] sm:$0xf0]  ;;  %v1926_v16 = vld [vmem:[%s2983_s1 + $0x230] sm:$0xf] }
 0x2a0   :  { %2072 = vpow2.f32 %v990_v13  ;;  %v1022_v55 = vmul.f32 %v2067_v12, %v1020_v48  ;;  %v2013_v13 = vld [vmem:[%s2983_s1 + $0x22c] sm:$0xf]  ;;  %v2015_v18 = vld [vmem:[%s2983_s1 + $0x238] sm:$0xf0]  ;;  %v1882_v48 = vld [vmem:[%s2983_s1 + $0x1e0] sm:$0xf] }
 0x2a1   :  { %v1004_v36 = vadd.f32 %v2065_v33, %v992_v28  ;;  %v996_v14 = vadd.f32 %v994_v25, %v984_v26  ;;  %2074 = vpow2.f32 %v1002_v32  ;;  %v1923_v22 = vor.u32 %v2013_v13, %v1920_v15  ;;  %v1906_v28 = vld [vmem:[%s2983_s1 + $0x210] sm:$0xf]  ;;  %v2011_v32 = vld [vmem:[%s2983_s1 + $0x218] sm:$0xf0]  ;;  %v2010_v33 = vld [vmem:[%s2983_s1 + $0x214] sm:$0xf] }
 0x2a2   :  { %2076 = vpow2.f32 %v1016_v29  ;;  %v1927_v26 = vor.u32 %v2015_v18, %v1926_v16  ;;  %v1908_v25 = vld [vmem:[%s2983_s1 + $0x21c] sm:$0xf0]  ;;  %v1914_v29 = vld [vmem:[%s2983_s1 + $0x218] sm:$0xf]  ;;  %v1996_v13 = vld [vmem:[%s2983_s1 + $0x1a0] sm:$0xf0] }
 0x2a3   :  { %v1018_v41 = vadd.f32 %v2067_v12, %v1004_v36  ;;  %v1010_v49 = vadd.f32 %v1008_v43, %v996_v14  ;;  %1287 = vmatpush.bf16.msra.mxu1 %v1923_v22  ;;  %v2012_v12 = vld [vmem:[%s2983_s1 + $0x220] sm:$0xf0]  ;;  %v1911_v36 = vor.u32 %v2010_v33, %v1908_v25  ;;  %v1894_v14 = vld [vmem:[%s2983_s1 + $0x1f8] sm:$0xf]  ;;  %v1902_v43 = vld [vmem:[%s2983_s1 + $0x200] sm:$0xf] }
 0x2a4   :  { %v2069_v42 = vpop.eup %2068  ;;  %1301 = vmatpush.bf16.msra.mxu2 %v1927_v26  ;;  %v1915_v39 = vor.u32 %v2012_v12, %v1914_v29  ;;  %v1848_v18 = vld [vmem:[%s2983_s1 + $0x1a4] sm:$0xf0]  ;;  %v1854_v22 = vld [vmem:[%s2983_s1 + $0x1a0] sm:$0xf]  ;;  %v1997_v26 = vld [vmem:[%s2983_s1 + $0x1a8] sm:$0xf0] }
 0x2a5   :  { %v2071_v44 = vpop.eup %2070  ;;  %2078 = vrcp.f32 %v1018_v41  ;;  %v969_v46 = vmul.f32 %v2069_v42, %v967_v40  ;;  %v1024_v27 = vadd.f32 %v1022_v55, %v1010_v49  ;;  %v2008_v40 = vld [vmem:[%s2983_s1 + $0x200] sm:$0xf0]  ;;  %v2007_v41 = vld [vmem:[%s2983_s1 + $0x1fc] sm:$0xf]  ;;  %v2005_v49 = vld [vmem:[%s2983_s1 + $0x1e8] sm:$0xf0] }
 0x2a6   :  { %v2073_v47 = vpop.eup %2072  ;;  %v979_v51 = vadd.f32 %v2071_v44, %v2069_v42  ;;  %v983_v53 = vmul.f32 %v2071_v44, %v981_v38  ;;  %v1895_v42 = vor.u32 %v2008_v40, %v1894_v14  ;;  %v1896_v38 = vld [vmem:[%s2983_s1 + $0x204] sm:$0xf0]  ;;  %v2009_v44 = vld [vmem:[%s2983_s1 + $0x208] sm:$0xf0]  ;;  %v1884_v55 = vld [vmem:[%s2983_s1 + $0x1ec] sm:$0xf0] }
 0x2a7   :  { %v2075_v59 = vpop.eup %2074  ;;  %v995_v63 = vmul.f32 %v2073_v47, %v871_v23  ;;  %v1907_v23 = vor.u32 %v2011_v32, %v1906_v28  ;;  %1288 = vmatpush.bf16.msra.mxu1 %v1911_v36  ;;  %v1855_v32 = vor.u32 %v1997_v26, %v1854_v22  ;;  %v1834_v33 = vld [vmem:[%s2983_s1 + $0x180] sm:$0xf]  ;;  %v1992_v25 = vld [vmem:[%s2983_s1 + $0x184] sm:$0xf]  ;;  %v1836_v12 = vld [vmem:[%s2983_s1 + $0x18c] sm:$0xf0] }
 0x2a8   :  { %v985_v56 = vadd.f32 %v983_v53, %v969_v46  ;;  %v993_v57 = vadd.f32 %v2073_v47, %v979_v51  ;;  %v2077_v2 = vpop.eup %2076  ;;  %v1009_v20 = vmul.f32 %v2075_v59, %v1007_v21  ;;  %1302 = vmatpush.bf16.msra.mxu2 %v1915_v39  ;;  %v1899_v46 = vor.u32 %v2007_v41, %v1896_v38  ;;  %v2004_v51 = vld [vmem:[%s2983_s1 + $0x1e4] sm:$0xf]  ;;  %v1872_v21 = vld [vmem:[%s2983_s1 + $0x1d4] sm:$0xf0]  ;;  %v1842_v36 = vld [vmem:[%s2983_s1 + $0x188] sm:$0xf] }
 0x2a9   :  { %v1023_v54 = vmul.f32 %v2077_v2, %v1021_v0  ;;  %v1903_v47 = vor.u32 %v2009_v44, %v1902_v43  ;;  %v1883_v53 = vor.u32 %v2005_v49, %v1882_v48  ;;  %v1994_v14 = vld [vmem:[%s2983_s1 + $0x190] sm:$0xf0]  ;;  %v1839_v41 = vor.u32 %v1992_v25, %v1836_v12 }
 0x2aa   :  { %v1005_v17 = vadd.f32 %v2075_v59, %v993_v57  ;;  %v997_v24 = vadd.f32 %v995_v63, %v985_v56  ;;  %v1890_v56 = vld [vmem:[%s2983_s1 + $0x1e8] sm:$0xf]  ;;  %v2006_v57 = vld [vmem:[%s2983_s1 + $0x1f0] sm:$0xf0]  ;;  %v1887_v59 = vor.u32 %v2004_v51, %v1884_v55  ;;  %v1843_v38 = vor.u32 %v1994_v14, %v1842_v36 }
 0x2ab   :  { %v2079_v50 = vpop.eup %2078  ;;  %1289 = vmatpush.bf16.msra.mxu1 %v1899_v46  ;;  %v1891_v63 = vor.u32 %v2006_v57, %v1890_v56 }
 0x2ac   :  { %v1028_v31 = vmul.f32 %v2079_v50, %v1024_v27  ;;  %v1019_v37 = vadd.f32 %v2077_v2, %v1005_v17  ;;  %v1011_v45 = vadd.f32 %v1009_v20, %v997_v24  ;;  %1303 = vmatpush.bf16.msra.mxu2 %v1903_v47  ;;  %v1870_v2 = vld [vmem:[%s2983_s1 + $0x1c8] sm:$0xf]  ;;  %v2002_v27 = vld [vmem:[%s2983_s1 + $0x1d0] sm:$0xf0]  ;;  %v2001_v17 = vld [vmem:[%s2983_s1 + $0x1cc] sm:$0xf] }
 0x2ad   :  { %v1871_v50 = vor.u32 %v2002_v27, %v1870_v2  ;;  %v1878_v24 = vld [vmem:[%s2983_s1 + $0x1d0] sm:$0xf] }
 0x2ae   :  { %1046 = vmatmul.f32.vlgmr.msrb.gmra.mxu3 %v1028_v31  ;;  %2080 = vrcp.f32 %v1019_v37  ;;  %v1025_v6 = vadd.f32 %v1023_v54, %v1011_v45  ;;  %v2003_v31 = vld [vmem:[%s2983_s1 + $0x1d8] sm:$0xf0]  ;;  %v1875_v37 = vor.u32 %v2001_v17, %v1872_v21  ;;  %v1858_v54 = vld [vmem:[%s2983_s1 + $0x1b0] sm:$0xf] }
 0x2af   :  { %1290 = vmatpush.bf16.msra.mxu1 %v1887_v59  ;;  %v1879_v20 = vor.u32 %v2003_v31, %v1878_v24  ;;  %v2025_v31 = vld [vmem:[%s2985_s3 + $0x1] ss:$0 sm:$0xff] }
 0x2b0   :  { %1304 = vmatpush.bf16.msra.mxu2 %v1891_v63 }
 0x2b3   :  { %1291 = vmatpush.bf16.msra.mxu1 %v1875_v37 }
 0x2b4   :  { %v2081_v1 = vpop.eup %2080  ;;  %1305 = vmatpush.bf16.msra.mxu2 %v1879_v20 }
 0x2b5   :  { %v1029_v34 = vmul.f32 %v2081_v1, %v1025_v6  ;;  %v1999_v6 = vld [vmem:[%s2983_s1 + $0x1b8] sm:$0xf0] }
 0x2b7   :  { %1049 = vmatmul.f32.gmra.mxu3 %v1029_v34  ;;  %v1859_v34 = vor.u32 %v1999_v6, %v1858_v54 }
 0x331   :  { %v1047_v5 = vpop.f32.mrf.mxu3 }
 0x332   :  { %v1055_v19 = vadd.f32 %v2024_v62, %v1047_v5  ;;  %v1860_v5 = vld [vmem:[%s2983_s1 + $0x1bc] sm:$0xf0] }
 0x334   :  { %v2786_v30 = vadd.f32 %v1055_v19, %v2768_v58  ;;  %v1918_v58 = vld [vmem:[%s2983_s1 + $0x228] sm:$0xf]  ;;  %v1866_v19 = vld [vmem:[%s2983_s1 + $0x1b8] sm:$0xf] }
 0x336   :  { %1059 = vadd.xlane.f32.xlu2 %v2786_v30  ;;  %v1065_v35 = vmul.f32 %v2786_v30, %v2786_v30 }
 0x338   :  { %1067 = vadd.xlane.f32.xlu0 %v1065_v35 }
 0x33a   :  { %v1050_v7 = vpop.f32.mrf.mxu3 }
 0x33b   :  { %v1056_v8 = vadd.f32 %v2024_v62, %v1050_v7  ;;  %v1998_v62 = vld [vmem:[%s2983_s1 + $0x1b4] sm:$0xf] }
 0x33d   :  { %v2792_v9 = vadd.f32 %v1056_v8, %v2770_v4  ;;  %v1919_v4 = vor.u32 %v2014_v11, %v1918_v58  ;;  %v1863_v8 = vor.u32 %v1998_v62, %v1860_v5  ;;  %v1846_v11 = vld [vmem:[%s2983_s1 + $0x198] sm:$0xf] }
 0x33e   :  { %v1847_v16 = vor.u32 %v1996_v13, %v1846_v11 }
 0x33f   :  { %1061 = vadd.xlane.f32.xlu2 %v2792_v9  ;;  %v1066_v10 = vmul.f32 %v2792_v9, %v2792_v9  ;;  %1273 = vmatpush.bf16.msra.mxu0 %v1919_v4  ;;  %v1995_v4 = vld [vmem:[%s2983_s1 + $0x19c] sm:$0xf] }
 0x340   :  { %1292 = vmatpush.bf16.msra.mxu1 %v1863_v8  ;;  %v1851_v28 = vor.u32 %v1995_v4, %v1848_v18 }
 0x341   :  { %1069 = vadd.xlane.f32.xlu1 %v1066_v10  ;;  %v2000_v10 = vld [vmem:[%s2983_s1 + $0x1c0] sm:$0xf0] }
 0x342   :  { %v1867_v58 = vor.u32 %v2000_v10, %v1866_v19 }
 0x343   :  { %1274 = vmatpush.bf16.msra.mxu0 %v1907_v23  ;;  %v1993_v23 = vld [vmem:[%s2983_s1 + $0x188] sm:$0xf0] }
 0x344   :  { %1306 = vmatpush.bf16.msra.mxu2 %v1867_v58  ;;  %v1835_v39 = vor.u32 %v1993_v23, %v1834_v33  ;;  %1293 = vmatpush.bf16.msra.mxu1 %v1851_v28 }
 0x347   :  { %1275 = vmatpush.bf16.msra.mxu0 %v1895_v42 }
 0x348   :  { %1307 = vmatpush.bf16.msra.mxu2 %v1855_v32  ;;  %1294 = vmatpush.bf16.msra.mxu1 %v1839_v41 }
 0x34b   :  { %1276 = vmatpush.bf16.msra.mxu0 %v1883_v53 }
 0x34c   :  { %1308 = vmatpush.bf16.msra.mxu2 %v1843_v38 }
 0x34f   :  { %1277 = vmatpush.bf16.msra.mxu0 %v1871_v50 }
 0x353   :  { %1278 = vmatpush.bf16.msra.mxu0 %v1859_v34 }
 0x357   :  { %1279 = vmatpush.bf16.msra.mxu0 %v1847_v16 }
 0x35b   :  { %1280 = vmatpush.bf16.msra.mxu0 %v1835_v39 }
 0x3a9   :  { %v1060_v45 = vpop.xlane.xlu2 %1059 }
 0x3aa   :  { %v2887_v0 = vmul.f32 0.03125, %v1060_v45 }
 0x3ab   :  { %v1068_v1 = vpop.xlane.xlu0 %1067 }
 0x3ac   :  { %v1073_v35 = vmul.f32 %v2887_v0, %v2887_v0  ;;  %v1071_v7 = vmul.f32 0.03125, %v1068_v1  ;;  %v1077_v50 = vsub.f32 %v2786_v30, %v2887_v0  ;;  %v2026_v1 = vld [vmem:[%s2986_s4 + $0x1] ss:$0 sm:$0xff] }
 0x3ae   :  { %v1075_v15 = vsub.f32 %v1071_v7, %v1073_v35 }
 0x3b0   :  { %v1079_v29 = vadd.f32 1e-05, %v1075_v15 }
 0x3b2   :  { %2082 = vrsqrt.f32 %v1079_v29  ;;  %v1062_v40 = vpop.xlane.xlu2 %1061  ;;  %vm1087_vm10 = vweird.f32 %v1079_v29 }
 0x3b3   :  { %v1064_v42 = vmul.f32 0.03125, %v1062_v40 }
 0x3b4   :  { %v1070_v43 = vpop.xlane.xlu1 %1069 }
 0x3b5   :  { %v1074_v44 = vmul.f32 %v1064_v42, %v1064_v42  ;;  %v1072_v46 = vmul.f32 0.03125, %v1070_v43  ;;  %v1078_v20 = vsub.f32 %v2792_v9, %v1064_v42 }
 0x3b7   :  { %v1076_v47 = vsub.f32 %v1072_v46, %v1074_v44 }
 0x3b8   :  { %v2083_v48 = vpop.eup %2082 }
 0x3b9   :  { %v1082_v49 = vmul.f32 %v2083_v48, %v1079_v29  ;;  %v1080_v51 = vadd.f32 1e-05, %v1076_v47  ;;  %vm1088_vm7 = vweird.f32 %v2083_v48 }
 0x3ba   :  { %vm1089_vm12 = vmor %vm1087_vm10, %vm1088_vm7 }
 0x3bb   :  { %v1083_v53 = vmul.f32 %v2083_v48, %v1082_v49  ;;  %2084 = vrsqrt.f32 %v1080_v51  ;;  %vm1097_vm14 = vweird.f32 %v1080_v51 }
 0x3bd   :  { %v1084_v55 = vmul.f32 0.5, %v1083_v53 }
 0x3bf   :  { %v1085_v56 = vsub.f32 1.5, %v1084_v55 }
 0x3c1   :  { %v2085_v57 = vpop.eup %2084  ;;  %v1086_v59 = vmul.f32 %v2083_v48, %v1085_v56 }
 0x3c2   :  { %v1092_v63 = vmul.f32 %v2085_v57, %v1080_v51  ;;  %vm1098_vm13 = vweird.f32 %v2085_v57 }
 0x3c3   :  { %v1090_v27 = vsel %vm1089_vm12, %v2083_v48, %v1086_v59  ;;  %vm1099_vm15 = vmor %vm1097_vm14, %vm1098_vm13 }
 0x3c4   :  { %v1093_v2 = vmul.f32 %v2085_v57, %v1092_v63  ;;  %v1101_v24 = vmul.f32 %v1090_v27, %v1077_v50 }
 0x3c6   :  { %v1094_v17 = vmul.f32 0.5, %v1093_v2  ;;  %v1105_v6 = vmul.f32 %v2025_v31, %v1101_v24 }
 0x3c8   :  { %v1095_v21 = vsub.f32 1.5, %v1094_v17  ;;  %v2954_v0 = vadd.f32 %v2026_v1, %v1105_v6 }
 0x3ca   :  { %v1096_v37 = vmul.f32 %v2085_v57, %v1095_v21 }
 0x3cc   :  { %v1100_v45 = vsel %vm1099_vm15, %v2085_v57, %v1096_v37 }
 0x3cd   :  { %v1102_v54 = vmul.f32 %v1100_v45, %v1078_v20 }
 0x3cf   :  { %v1106_v30 = vmul.f32 %v2025_v31, %v1102_v54 }
 0x3d1   :  { %v2956_v34 = vadd.f32 %v2026_v1, %v1106_v30 }
 0x3d3   :  { %v1111_v62 = vpack.c.bf16 %v2956_v34, %v2954_v0 }
 0x3d5   :  { %1281 = vmatmul.bf16.vlgmr.msra.gmra.mxu0 %v1111_v62  ;;  %1295 = vmatmul.bf16.vlgmr.msra.gmra.mxu1 %v1111_v62 }
 0x3d6   :  { %1309 = vmatmul.bf16.vlgmr.msra.gmra.mxu2 %v1111_v62 }
 0x452   :  { %v1296_v9 = vpop.f32.mrf.mxu1 }
 0x453   :  { %v1315_v5 = vrot.slane %v1296_v9, 6  ;;  %v1325_v19 = vrot.slane %v1296_v9, 7  ;;  %v1347_v35 = vrot.slane %v1296_v9, 1  ;;  %v1359_v7 = vrot.slane %v1296_v9, 2 }
 0x459   :  { %v1310_v8 = vpop.f32.mrf.mxu2 }
 0x45a   :  { %v1317_v10 = vadd.f32 %v1315_v5, %v1310_v8  ;;  %v1327_v58 = vadd.f32 %v1325_v19, %v1310_v8  ;;  %v1337_v11 = vadd.f32 %v1310_v8, %v1296_v9  ;;  %v1349_v13 = vadd.f32 %v1347_v35, %v1310_v8  ;;  %v1298_v18 = vpop.f32.mrf.mxu1 }
 0x45b   :  { %v1361_v4 = vadd.f32 %v1359_v7, %v1310_v8  ;;  %v1316_v23 = vrot.slane %v1298_v18, 6  ;;  %v1326_v36 = vrot.slane %v1298_v18, 7  ;;  %v1348_v14 = vrot.slane %v1298_v18, 1  ;;  %v1282_v8 = vpop.f32.mrf.mxu0 }
 0x45c   :  { %v1319_v15 = vmul.f32 0.2, %v1317_v10  ;;  %v1329_v16 = vmul.f32 0.2, %v1327_v58  ;;  %v1339_v22 = vmul.f32 0.2, %v1337_v11 }
 0x45d   :  { %v1351_v26 = vmul.f32 0.2, %v1349_v13  ;;  %v1363_v33 = vmul.f32 0.2, %v1361_v4  ;;  %v1360_v40 = vrot.slane %v1298_v18, 2 }
 0x45e   :  { %v1321_v28 = vmax.f32 %v1317_v10, %v1319_v15  ;;  %v1331_v32 = vmax.f32 %v1327_v58, %v1329_v16  ;;  %v1341_v39 = vmax.f32 %v1337_v11, %v1339_v22  ;;  %v1393_v22 = vrot.slane %v1282_v8, 7 }
 0x45f   :  { %v1353_v12 = vmax.f32 %v1349_v13, %v1351_v26  ;;  %v1365_v38 = vmax.f32 %v1361_v4, %v1363_v33  ;;  %v1379_v13 = vrot.slane %v1282_v8, 6 }
 0x460   :  { %v1323_v25 = vadd.f32 %v1321_v28, %v2411_v52  ;;  %v1333_v29 = vadd.f32 %v1331_v32, %v2421_v60 }
 0x461   :  { %v1312_v41 = vpop.f32.mrf.mxu2  ;;  %v1355_v51 = vadd.f32 %v1353_v12, %v2423_v61  ;;  %v1367_v59 = vadd.f32 %v1365_v38, %v2429_v3 }
 0x462   :  { %v1335_v42 = vmax.f32 %v1323_v25, %v1333_v29  ;;  %v1318_v43 = vadd.f32 %v1316_v23, %v1312_v41  ;;  %v1328_v44 = vadd.f32 %v1326_v36, %v1312_v41  ;;  %v1338_v46 = vadd.f32 %v1312_v41, %v1298_v18 }
 0x463   :  { %v1350_v47 = vadd.f32 %v1348_v14, %v1312_v41  ;;  %v1362_v48 = vadd.f32 %v1360_v40, %v1312_v41  ;;  %v1284_v41 = vpop.f32.mrf.mxu0 }
 0x464   :  { %v1345_v49 = vmax.f32 %v1335_v42, %v1341_v39  ;;  %v1320_v53 = vmul.f32 0.2, %v1318_v43  ;;  %v1330_v55 = vmul.f32 0.2, %v1328_v44  ;;  %v1340_v27 = vmul.f32 0.2, %v1338_v46 }
 0x465   :  { %v1352_v56 = vmul.f32 0.2, %v1350_v47  ;;  %v1364_v17 = vmul.f32 0.2, %v1362_v48 }
 0x466   :  { %v1357_v57 = vmax.f32 %v1345_v49, %v1355_v51  ;;  %v1322_v63 = vmax.f32 %v1318_v43, %v1320_v53  ;;  %v1332_v2 = vmax.f32 %v1328_v44, %v1330_v55  ;;  %v1342_v1 = vmax.f32 %v1338_v46, %v1340_v27 }
 0x467   :  { %v1354_v31 = vmax.f32 %v1350_v47, %v1352_v56  ;;  %v1366_v30 = vmax.f32 %v1362_v48, %v1364_v17  ;;  %v1419_v46 = vrot.slane %v1282_v8, 1  ;;  %v1380_v48 = vrot.slane %v1284_v41, 6 }
 0x468   :  { %v1369_v50 = vmax.f32 %v1357_v57, %v1367_v59  ;;  %v1324_v21 = vadd.f32 %v1322_v63, %v2411_v52  ;;  %v1334_v24 = vadd.f32 %v1332_v2, %v2421_v60  ;;  %v1394_v53 = vrot.slane %v1284_v41, 7 }
 0x469   :  { %v1356_v7 = vadd.f32 %v1354_v31, %v2423_v61  ;;  %v1368_v10 = vadd.f32 %v1366_v30, %v2429_v3  ;;  %v1433_v63 = vrot.slane %v1282_v8, 2 }
 0x46a   :  { %v1371_v37 = vsub.f32 %v1323_v25, %v1369_v50  ;;  %v1385_v20 = vsub.f32 %v1333_v29, %v1369_v50  ;;  %v1399_v45 = vsub.f32 %v1341_v39, %v1369_v50  ;;  %v1411_v54 = vsub.f32 %v1355_v51, %v1369_v50 }
 0x46b   :  { %v1336_v6 = vmax.f32 %v1324_v21, %v1334_v24  ;;  %v1425_v19 = vsub.f32 %v1367_v59, %v1369_v50 }
 0x46c   :  { %v1373_v62 = vmul.f32 1.442695, %v1371_v37  ;;  %v1387_v9 = vmul.f32 1.442695, %v1385_v20  ;;  %v1401_v5 = vmul.f32 1.442695, %v1399_v45 }
 0x46d   :  { %v1346_v35 = vmax.f32 %v1336_v6, %v1342_v1  ;;  %v1413_v52 = vmul.f32 1.442695, %v1411_v54  ;;  %v1427_v58 = vmul.f32 1.442695, %v1425_v19  ;;  %v1434_v19 = vrot.slane %v1284_v41, 2 }
 0x46e   :  { %2086 = vpow2.f32 %v1373_v62 }
 0x46f   :  { %2088 = vpow2.f32 %v1387_v9  ;;  %v1358_v60 = vmax.f32 %v1346_v35, %v1356_v7 }
 0x470   :  { %2090 = vpow2.f32 %v1401_v5 }
 0x471   :  { %v1370_v11 = vmax.f32 %v1358_v60, %v1368_v10  ;;  %2092 = vpow2.f32 %v1413_v52 }
 0x472   :  { %2094 = vpow2.f32 %v1427_v58 }
 0x473   :  { %v1372_v4 = vsub.f32 %v1324_v21, %v1370_v11  ;;  %v1386_v15 = vsub.f32 %v1334_v24, %v1370_v11  ;;  %v1400_v16 = vsub.f32 %v1342_v1, %v1370_v11  ;;  %v1412_v26 = vsub.f32 %v1356_v7, %v1370_v11 }
 0x474   :  { %v2087_v18 = vpop.eup %2086  ;;  %v1426_v61 = vsub.f32 %v1368_v10, %v1370_v11  ;;  %v1420_v1 = vrot.slane %v1284_v41, 1  ;;  %v2027_v10 = vld [vmem:[%s2984_s2 + $0x2] ss:$0 sm:$0xff] }
 0x475   :  { %v2089_v28 = vpop.eup %2088  ;;  %v1375_v32 = vmul.f32 1.442695, %v1372_v4  ;;  %v1389_v33 = vmul.f32 1.442695, %v1386_v15  ;;  %v1403_v23 = vmul.f32 1.442695, %v1400_v16  ;;  %v1381_v25 = vmul.f32 %v2087_v18, %v1379_v13 }
 0x476   :  { %v2091_v29 = vpop.eup %2090  ;;  %v1391_v3 = vadd.f32 %v2089_v28, %v2087_v18  ;;  %v1395_v12 = vmul.f32 %v2089_v28, %v1393_v22  ;;  %v1415_v36 = vmul.f32 1.442695, %v1412_v26  ;;  %v1429_v42 = vmul.f32 1.442695, %v1426_v61 }
 0x477   :  { %2096 = vpow2.f32 %v1375_v32  ;;  %v2093_v40 = vpop.eup %2092  ;;  %v1407_v38 = vmul.f32 %v2091_v29, %v1282_v8 }
 0x478   :  { %2098 = vpow2.f32 %v1389_v33  ;;  %v1397_v39 = vadd.f32 %v1395_v12, %v1381_v25  ;;  %v1405_v14 = vadd.f32 %v2091_v29, %v1391_v3  ;;  %v2095_v43 = vpop.eup %2094  ;;  %v1421_v55 = vmul.f32 %v2093_v40, %v1419_v46 }
 0x479   :  { %2100 = vpow2.f32 %v1403_v23  ;;  %v1435_v50 = vmul.f32 %v2095_v43, %v1433_v63 }
 0x47a   :  { %v1417_v44 = vadd.f32 %v2093_v40, %v1405_v14  ;;  %v1409_v47 = vadd.f32 %v1407_v38, %v1397_v39  ;;  %2102 = vpow2.f32 %v1415_v36 }
 0x47b   :  { %2104 = vpow2.f32 %v1429_v42 }
 0x47c   :  { %v1431_v49 = vadd.f32 %v2095_v43, %v1417_v44  ;;  %v1423_v2 = vadd.f32 %v1421_v55, %v1409_v47  ;;  %v2028_v47 = vld [vmem:[%s2985_s3 + $0x2] ss:$0 sm:$0xff]  ;;  %s2142_s3 = smov [#allocation2]  }
 0x47d   :  { %v2097_v51 = vpop.eup %2096  ;;  %v2029_v55 = vld [vmem:[%s2986_s4 + $0x2] ss:$0 sm:$0xff]  ;;  %s1530_s17 = sshll.u32 %s2142_s3, 4  ;;  %s2143_s4 = smov 128   ;;  %s1531_s17 = int_to_ptr.vmem [resolvable:$true] %s1530_s17 }
 0x47e   :  { %v2099_v56 = vpop.eup %2098  ;;  %2106 = vrcp.f32 %v1431_v49  ;;  %v1382_v57 = vmul.f32 %v2097_v51, %v1380_v48  ;;  %v1437_v45 = vadd.f32 %v1435_v50, %v1423_v2 }
 0x47f   :  { %v2101_v59 = vpop.eup %2100  ;;  %v1392_v27 = vadd.f32 %v2099_v56, %v2097_v51  ;;  %v1396_v17 = vmul.f32 %v2099_v56, %v1394_v53 }
 0x480   :  { %v2103_v31 = vpop.eup %2102  ;;  %v1408_v37 = vmul.f32 %v2101_v59, %v1284_v41 }
 0x481   :  { %v1398_v21 = vadd.f32 %v1396_v17, %v1382_v57  ;;  %v1406_v24 = vadd.f32 %v2101_v59, %v1392_v27  ;;  %v2105_v20 = vpop.eup %2104  ;;  %v1422_v5 = vmul.f32 %v2103_v31, %v1420_v1 }
 0x482   :  { %v1436_v7 = vmul.f32 %v2105_v20, %v1434_v19 }
 0x483   :  { %v1418_v54 = vadd.f32 %v2103_v31, %v1406_v24  ;;  %v1410_v30 = vadd.f32 %v1408_v37, %v1398_v21 }
 0x484   :  { %v2107_v6 = vpop.eup %2106 }
 0x485   :  { %v1441_v62 = vmul.f32 %v2107_v6, %v1437_v45  ;;  %v1432_v9 = vadd.f32 %v2105_v20, %v1418_v54  ;;  %v1424_v35 = vadd.f32 %v1422_v5, %v1410_v30 }
 0x487   :  { %1459 = vmatmul.f32.vlgmr.msra.gmra.mxu3 %v1441_v62  ;;  %2108 = vrcp.f32 %v1432_v9  ;;  %v1438_v8 = vadd.f32 %v1436_v7, %v1424_v35 }
 0x48d   :  { %v2109_v52 = vpop.eup %2108 }
 0x48e   :  { %v1442_v60 = vmul.f32 %v2109_v52, %v1438_v8 }
 0x490   :  { %1462 = vmatmul.f32.gmra.mxu3 %v1442_v60 }
 0x50a   :  { %v1460_v58 = vpop.f32.mrf.mxu3 }
 0x50b   :  { %v1468_v11 = vadd.f32 %v2027_v10, %v1460_v58 }
 0x50d   :  { %v1470_v13 = vadd.f32 %v1468_v11, %v2954_v0 }
 0x50f   :  { %1472 = vadd.xlane.f32.xlu2 %v1470_v13  ;;  %v1478_v4 = vmul.f32 %v1470_v13, %v1470_v13 }
 0x511   :  { %1480 = vadd.xlane.f32.xlu1 %v1478_v4 }
 0x513   :  { %v1463_v15 = vpop.f32.mrf.mxu3 }
 0x514   :  { %v1469_v16 = vadd.f32 %v2027_v10, %v1463_v15 }
 0x516   :  { %v1471_v18 = vadd.f32 %v1469_v16, %v2956_v34 }
 0x518   :  { %1474 = vadd.xlane.f32.xlu0 %v1471_v18  ;;  %v1479_v22 = vmul.f32 %v1471_v18, %v1471_v18 }
 0x51a   :  { %1482 = vadd.xlane.f32.xlu2 %v1479_v22 }
 0x582   :  { %v1473_v26 = vpop.xlane.xlu2 %1472 }
 0x583   :  { %v1476_v61 = vmul.f32 0.03125, %v1473_v26 }
 0x584   :  { %v1481_v28 = vpop.xlane.xlu1 %1480 }
 0x585   :  { %v1486_v32 = vmul.f32 %v1476_v61, %v1476_v61  ;;  %v1484_v33 = vmul.f32 0.03125, %v1481_v28  ;;  %v1490_v46 = vsub.f32 %v1470_v13, %v1476_v61 }
 0x587   :  { %v1488_v23 = vsub.f32 %v1484_v33, %v1486_v32 }
 0x589   :  { %v1492_v25 = vadd.f32 1e-05, %v1488_v23 }
 0x58b   :  { %2110 = vrsqrt.f32 %v1492_v25  ;;  %v1475_v29 = vpop.xlane.xlu0 %1474  ;;  %vm1500_vm8 = vweird.f32 %v1492_v25 }
 0x58c   :  { %v1477_v0 = vmul.f32 0.03125, %v1475_v29 }
 0x58d   :  { %v1483_v3 = vpop.xlane.xlu2 %1482 }
 0x58e   :  { %v1487_v12 = vmul.f32 %v1477_v0, %v1477_v0  ;;  %v1485_v36 = vmul.f32 0.03125, %v1483_v3  ;;  %v1491_v27 = vsub.f32 %v1471_v18, %v1477_v0 }
 0x590   :  { %v1489_v39 = vsub.f32 %v1485_v36, %v1487_v12 }
 0x591   :  { %v2111_v14 = vpop.eup %2110 }
 0x592   :  { %v1495_v40 = vmul.f32 %v2111_v14, %v1492_v25  ;;  %v1493_v34 = vadd.f32 1e-05, %v1489_v39  ;;  %vm1501_vm6 = vweird.f32 %v2111_v14 }
 0x593   :  { %vm1502_vm9 = vmor %vm1500_vm8, %vm1501_vm6 }
 0x594   :  { %v1496_v41 = vmul.f32 %v2111_v14, %v1495_v40  ;;  %2112 = vrsqrt.f32 %v1493_v34  ;;  %vm1510_vm0 = vweird.f32 %v1493_v34 }
 0x596   :  { %v1497_v42 = vmul.f32 0.5, %v1496_v41 }
 0x598   :  { %v1498_v38 = vsub.f32 1.5, %v1497_v42 }
 0x59a   :  { %v2113_v43 = vpop.eup %2112  ;;  %v1499_v44 = vmul.f32 %v2111_v14, %v1498_v38 }
 0x59b   :  { %v1505_v48 = vmul.f32 %v2113_v43, %v1493_v34  ;;  %vm1511_vm11 = vweird.f32 %v2113_v43 }
 0x59c   :  { %v1503_v49 = vsel %vm1502_vm9, %v2111_v14, %v1499_v44  ;;  %vm1512_vm1 = vmor %vm1510_vm0, %vm1511_vm11 }
 0x59d   :  { %v1514_v51 = vmul.f32 %v1503_v49, %v1490_v46  ;;  %v1506_v53 = vmul.f32 %v2113_v43, %v1505_v48 }
 0x59f   :  { %v1518_v56 = vmul.f32 %v2028_v47, %v1514_v51  ;;  %v1507_v57 = vmul.f32 0.5, %v1506_v53 }
 0x5a1   :  { %v1508_v59 = vsub.f32 1.5, %v1507_v57  ;;  %v1522_v63 = vadd.f32 %v2029_v55, %v1518_v56 }
 0x5a3   :  { %v1509_v2 = vmul.f32 %v2113_v43, %v1508_v59  ;;  %1524 = vst [vmem:[#allocation2] sm:$0xff] %v1522_v63 }
 0x5a5   :  { %v1513_v17 = vsel %vm1512_vm1, %v2113_v43, %v1509_v2 }
 0x5a6   :  { %v1515_v50 = vmul.f32 %v1513_v17, %v1491_v27 }
 0x5a8   :  { %v1519_v21 = vmul.f32 %v2028_v47, %v1515_v50 }
 0x5aa   :  { %v1523_v24 = vadd.f32 %v2029_v55, %v1519_v21 }
 0x5ac   :  { %1525 = vst [vmem:[#allocation2 + $0x8] sm:$0xff] %v1523_v24 }
 0x5ad   :  { %1538 = dma.vmem_to_hbm [thread:$0]  %s1531_s17, 256, %s1533_s20, [#allocation3], %s2143_s4, %s2143_s4, %s2144_s21  }
 0x5ae   :  { %2138 = dma.done.wait [#allocation3], 256  }
 0x5af   :  { %2139 = vsyncadd [#allocation3], 4294967040 }
 0x5b0   :  { %1543 = vsyncpa [#allocation3], 1 }

</bundles_post_ra>
